<compile_context>
chip_gen: v7x
topology: tpu7x:2x2x1
jax: 0.10.0
libtpu: 0.0.40
codegen_flags: <defaults>
</compile_context>

<pallas_src>
import functools
import math

import jax
import jax.numpy as jnp
from jax.experimental import pallas as pl
from jax.experimental.pallas import tpu as pltpu

EPS = 1e-5
_TILE_BUDGET_BYTES = 4 << 20     # per-grid-step working set (double-buffer aware)
_MAX_TILE_ROWS = 2048            # review: ~512-2048 rows per tile
_VMEM_LIMIT_BYTES = 32 * 1024 * 1024

_COMPILER_PARAMS = pltpu.CompilerParams(
    dimension_semantics=("parallel",),        # row-tile axis is fully parallel
    vmem_limit_bytes=_VMEM_LIMIT_BYTES,
)


# ---------------------------------------------------------------------------
# Pallas kernels
# ---------------------------------------------------------------------------
def _conv_sum_kernel(*refs, meta, L, cout, n_in, with_stats):
    """y = sum_i conv1d(x_i, w_i)  (+ optional per-tile BN partial statistics).

    ref order:
      x_0..x_{n-1}   k==1: (rows, cin) bf16      k==3: (TN, L, cin) bf16
      w_0..w_{n-1}   k==1: (cin, cout) bf16      k==3: (3, cin, cout) bf16
      y_ref          (rows, cout)
      [s1, s2]       (1, 1, cout) f32 per-tile sum / sum-of-squares
      pad_0..        VMEM scratch (TN, L+2, cin) bf16, one per k==3 input
    """
    xs = refs[:n_in]
    ws = refs[n_in:2 * n_in]
    y_ref = refs[2 * n_in]
    pos = 2 * n_in + 1
    if with_stats:
        s1_ref, s2_ref = refs[pos], refs[pos + 1]
        pos += 2
    pad_refs = refs[pos:]

    rows = y_ref.shape[0]
    acc = jnp.zeros((rows, cout), jnp.float32)

    pad_i = 0
    for i, (k, cin) in enumerate(meta):           # static unroll over fused inputs
        x_ref, w_ref = xs[i], ws[i]
        if k == 1:
            acc += jnp.dot(x_ref[...], w_ref[...],
                           preferred_element_type=jnp.float32)
        else:
            pad = pad_refs[pad_i]
            pad_i += 1
            tn = x_ref.shape[0]
            zero = jnp.zeros((tn, 1, cin), pad.dtype)
            pad[:, 0:1, :] = zero                 # 'same' padding, left  (in VMEM)
            pad[:, L + 1:L + 2, :] = zero         # 'same' padding, right (in VMEM)
            pad[:, 1:L + 1, :] = x_ref[...]
            for t in range(3):                    # static unroll over conv taps
                acc += jnp.dot(pad[:, t:t + L, :].reshape(rows, cin), w_ref[t],
                               preferred_element_type=jnp.float32)

    y_ref[...] = acc.astype(y_ref.dtype)
    if with_stats:
        s1_ref[...] = jnp.sum(acc, axis=0, keepdims=True).reshape(1, 1, cout)
        s2_ref[...] = jnp.sum(acc * acc, axis=0, keepdims=True).reshape(1, 1, cout)


def _bn_silu_kernel(y_ref, scale_ref, shift_ref, o_ref):
    """o = SiLU(y * scale + shift); scale/shift already fold mean/var/gamma/beta."""
    y = y_ref[...].astype(jnp.float32)
    yhat = y * scale_ref[...] + shift_ref[...]
    sig = pl.reciprocal(1.0 + jnp.exp(-yhat), approx=True)   # EUP sigmoid
    o_ref[...] = (yhat * sig).astype(o_ref.dtype)


# ---------------------------------------------------------------------------
# Tile-size selection (conservative budget -> fits v5e/v6e and v7x VMEM)
# ---------------------------------------------------------------------------
def _pick_batch_tile(n, l, per_row_bytes):
    """Largest TN dividing N with TN*L rows sublane-aligned and within budget."""
    cands = [tn for tn in range(1, n + 1)
             if n % tn == 0 and ((tn * l) % 8 == 0 or tn == n)]
    best = None
    for tn in cands:
        rows = tn * l
        if rows <= _MAX_TILE_ROWS and rows * per_row_bytes <= _TILE_BUDGET_BYTES:
            best = tn
    if best is None:
        best = cands[0] if cands else n
    return best


def _pick_row_tile(r, per_row_bytes):
    best = None
    for rt in range(8, r + 1, 8):
        if r % rt == 0 and rt <= _MAX_TILE_ROWS and rt * per_row_bytes <= _TILE_BUDGET_BYTES:
            best = rt
    return best if best is not None else r


# ---------------------------------------------------------------------------
# pallas_call wrappers
# ---------------------------------------------------------------------------
def conv_sum(inputs, weights, *, with_stats, out_dtype=jnp.bfloat16):
    """y = sum_i conv1d(inputs[i], weights[i]) over a row-tiled, pipelined grid.

    inputs[i]: (N, L, cin_i).  weights[i]: (cin, cout) for k=1, (3, cin, cout)
    for k=3.  Returns flat (N*L, cout) [plus per-tile stats if requested].
    """
    n, l, _ = inputs[0].shape
    cout = int(weights[0].shape[-1])
    meta = tuple((3 if w.ndim == 3 else 1, int(w.shape[-2])) for w in weights)

    per_row = sum((6 if k == 3 else 4) * cin for k, cin in meta) + 8 * cout
    tn = _pick_batch_tile(n, l, per_row)
    grid = (n // tn,)
    rows_t = tn * l

    in_specs, call_args = [], []
    for (k, cin), x in zip(meta, inputs):
        x = x.astype(jnp.bfloat16)
        if k == 1:
            call_args.append(x.reshape(n * l, cin))
            in_specs.append(pl.BlockSpec((rows_t, cin), lambda i: (i, 0)))
        else:
            call_args.append(x)
            in_specs.append(pl.BlockSpec((tn, l, cin), lambda i: (i, 0, 0)))
    for w in weights:
        call_args.append(w.astype(jnp.bfloat16))
        in_specs.append(pl.BlockSpec(w.shape, lambda i, nd=w.ndim: (0,) * nd))

    out_shape = [jax.ShapeDtypeStruct((n * l, cout), out_dtype)]
    out_specs = [pl.BlockSpec((rows_t, cout), lambda i: (i, 0))]
    if with_stats:
        out_shape += [jax.ShapeDtypeStruct((grid[0], 1, cout), jnp.float32)] * 2
        out_specs += [pl.BlockSpec((1, 1, cout), lambda i: (i, 0, 0))] * 2

    scratch = [pltpu.VMEM((tn, l + 2, cin), jnp.bfloat16)
               for k, cin in meta if k == 3]

    kernel = functools.partial(_conv_sum_kernel, meta=meta, L=l, cout=cout,
                               n_in=len(inputs), with_stats=with_stats)
    return pl.pallas_call(
        kernel,
        grid=grid,
        in_specs=in_specs,
        out_specs=tuple(out_specs) if with_stats else out_specs[0],
        out_shape=tuple(out_shape) if with_stats else out_shape[0],
        scratch_shapes=scratch,
        compiler_params=_COMPILER_PARAMS,
    )(*call_args)


def bn_silu_apply(y_flat, scale, shift):
    """Row-tiled pass 2: out = SiLU(y * scale + shift), returns bf16 (R, C)."""
    r, c = y_flat.shape
    rt = _pick_row_tile(r, 16 * c)
    return pl.pallas_call(
        _bn_silu_kernel,
        grid=(r // rt,),
        in_specs=[pl.BlockSpec((rt, c), lambda i: (i, 0)),
                  pl.BlockSpec((1, c), lambda i: (0, 0)),
                  pl.BlockSpec((1, c), lambda i: (0, 0))],
        out_specs=pl.BlockSpec((rt, c), lambda i: (i, 0)),
        out_shape=jax.ShapeDtypeStruct((r, c), jnp.bfloat16),
        compiler_params=_COMPILER_PARAMS,
    )(y_flat, scale.reshape(1, c), shift.reshape(1, c))


def _bn_scale_shift(s1, s2, gamma, beta, rows):
    """Fold per-tile partial sums into per-channel affine scale/shift (f32)."""
    mean = jnp.sum(s1, axis=(0, 1)) / rows
    ex2 = jnp.sum(s2, axis=(0, 1)) / rows
    var = jnp.maximum(ex2 - mean * mean, 0.0)      # biased, training-mode variance
    scale = gamma.astype(jnp.float32) * jax.lax.rsqrt(var + EPS)
    shift = beta.astype(jnp.float32) - mean * scale
    return scale, shift


def conv_bn_silu(inputs, weights, gamma, beta):
    """SiLU(BatchNorm(sum_i conv1d(x_i, w_i))) with full-(N,L) batch statistics."""
    n, l, _ = inputs[0].shape
    y, s1, s2 = conv_sum(inputs, weights, with_stats=True)
    scale, shift = _bn_scale_shift(s1, s2, gamma, beta, n * l)
    return bn_silu_apply(y, scale, shift).reshape(n, l, -1)


# ---------------------------------------------------------------------------
# Deterministic parameter initialization (shapes follow the torch __init__)
# ---------------------------------------------------------------------------
class _KeyGen:
    def __init__(self, seed=0):
        self._base = jax.random.PRNGKey(seed)
        self._i = 0

    def __call__(self):
        self._i += 1
        return jax.random.fold_in(self._base, self._i)


def conv_weight(kg, cin, cout, k):
    scale = 1.0 / math.sqrt(cin * k)
    shape = (cin, cout) if k == 1 else (k, cin, cout)
    return jax.random.uniform(kg(), shape, jnp.float32, -scale, scale)


def bn_params(kg, c):
    gamma = 1.0 + 0.1 * jax.random.normal(kg(), (c,), jnp.float32)
    beta = 0.1 * jax.random.normal(kg(), (c,), jnp.float32)
    return gamma, beta


# --- RepConvN: 3-tap + 1-tap (+ identity if bn and c1==c2) folded into one
#     3-tap weight.  Exact: the branches are summed before the shared BN.
def init_repconvn(kg, c1, c2, bn=False, last=False):
    w3 = conv_weight(kg, c1, c2, 3)
    w1 = conv_weight(kg, c1, c2, 1)
    w = w3.at[1].add(w1)                                   # 1x1 branch -> center tap
    if bn and c1 == c2:
        w = w.at[1].add(jnp.eye(c1, dtype=jnp.float32))    # identity branch
    p = {"w": w}
    if not last:
        p["gamma"], p["beta"] = bn_params(kg, c2)
    return p


def repconvn_fwd(p, x):
    # non-LastLayer RepConvN: SiLU(BN(conv3 + conv1 + id)) via folded weight.
    return conv_bn_silu([x], [p["w"]], p["gamma"], p["beta"])


# --- RepNBottleneck
def init_bottleneck(kg, c1, c2, shortcut=True, e=1.0):
    c_ = int(c2 * e)
    add = shortcut and c1 == c2
    p = {"cv1": init_repconvn(kg, c1, c_, bn=True),
         "cv2_w": init_repconvn(kg, c_, c2, bn=True, last=True)["w"]}
    w3 = conv_weight(kg, c1, c2, 1)
    if add:
        w3 = w3 + jnp.eye(c1, dtype=jnp.float32)           # fold "x + ..." shortcut
    p["w3"] = w3
    p["gamma"], p["beta"] = bn_params(kg, c2)
    return p


def bottleneck_fwd(p, x):
    h = repconvn_fwd(p["cv1"], x)
    # fused single pass over HBM: conv3(h, cv2) + conv1(x, w3[+I]) -> BN -> SiLU
    return conv_bn_silu([h, x], [p["cv2_w"], p["w3"]], p["gamma"], p["beta"])


# --- RepNCSP
def init_repncsp(kg, c1, c2, n=1, shortcut=True, e=0.5):
    c_ = int(c2 * e)
    p = {"cv1_w": conv_weight(kg, c1, c_, 1),
         "cv2_w": conv_weight(kg, c1, c_, 1)}
    p["cv1_g"], p["cv1_b"] = bn_params(kg, c_)
    p["cv2_g"], p["cv2_b"] = bn_params(kg, c_)
    w3 = conv_weight(kg, 2 * c_, c2, 1)
    p["cv3_wa"], p["cv3_wb"] = w3[:c_], w3[c_:]            # fold torch.cat away
    w4 = conv_weight(kg, c1, c2, 1)
    if c1 == c2:
        w4 = w4 + jnp.eye(c1, dtype=jnp.float32)           # fold "+ x" shortcut
    p["cv4_w"] = w4
    p["m"] = [init_bottleneck(kg, c_, c_, shortcut, e=1.0) for _ in range(n)]
    p["gamma"], p["beta"] = bn_params(kg, c2)
    return p


def repncsp_fwd(p, x):
    a = conv_bn_silu([x], [p["cv1_w"]], p["cv1_g"], p["cv1_b"])
    for bp in p["m"]:
        a = bottleneck_fwd(bp, a)
    b = conv_bn_silu([x], [p["cv2_w"]], p["cv2_g"], p["cv2_b"])
    # fused: cv3(cat(a, b)) + cv4(x)[+x] -> BN -> SiLU   (no concatenate in HBM)
    return conv_bn_silu([a, b, x], [p["cv3_wa"], p["cv3_wb"], p["cv4_w"]],
                        p["gamma"], p["beta"])


# --- RepNCSPELAN4
def init_elan4(kg, c1, c2, c3, c4, c5=1):
    p = {"cv1_w": conv_weight(kg, c1, c3, 1), "c3": c3}
    p["cv1_g"], p["cv1_b"] = bn_params(kg, c3)
    w4 = conv_weight(kg, c3 + 2 * c4, c2, 1)
    p["cv4_w_t"] = w4[:c3]                    # cat(y0, y1) is exactly the cv1 output
    p["cv4_w_y2"] = w4[c3:c3 + c4]
    p["cv4_w_y3"] = w4[c3 + c4:]
    p["cv2"] = (init_repncsp(kg, c3 // 2, c4, c5), init_repconvn(kg, c4, c4, bn=True))
    p["cv3"] = (init_repncsp(kg, c4, c4, c5), init_repconvn(kg, c4, c4, bn=True))
    return p


def elan4_forward(p, x_ncl):
    n, _, l = x_ncl.shape
    x = jnp.transpose(x_ncl, (0, 2, 1)).astype(jnp.bfloat16)   # NCL -> NLC, bf16
    t = conv_bn_silu([x], [p["cv1_w"]], p["cv1_g"], p["cv1_b"])
    h = p["c3"] // 2
    y1 = t[..., h:]                                            # torch .chunk(2, dim=1)[1]
    y2 = repconvn_fwd(p["cv2"][1], repncsp_fwd(p["cv2"][0], y1))
    y3 = repconvn_fwd(p["cv3"][1], repncsp_fwd(p["cv3"][0], y2))
    # cv4(cat(y0, y1, y2, y3)) == t @ W[:c3] + y2 @ W[c3:c3+c4] + y3 @ W[c3+c4:]
    out = conv_sum([t, y2, y3], [p["cv4_w_t"], p["cv4_w_y2"], p["cv4_w_y3"]],
                   with_stats=False, out_dtype=jnp.float32)
    return jnp.transpose(out.reshape(n, l, -1), (0, 2, 1))     # back to (N, C2, L)


# ---------------------------------------------------------------------------
if __name__ == "__main__":
    c1, c2, c3, c4, c5 = 4, 8, 8, 4, 1
    N, L = 2, 16

    kg = _KeyGen(0)
    params = init_elan4(kg, c1, c2, c3, c4, c5)

    x = jax.random.normal(jax.random.PRNGKey(0), (N, c1, L), jnp.float32)

    fwd = jax.jit(lambda xx: elan4_forward(params, xx))
    out = jax.block_until_ready(fwd(x))

    assert out.shape == (N, c2, L), out.shape
    assert bool(jnp.all(jnp.isfinite(out)))
    print("KERNEL_OK")
</pallas_src>

<mosaic_0001>
module attributes {stable_mosaic.version = 11 : i64} {
  func.func @_conv_sum_kernel(%arg0: i32, %arg1: memref<32x4xbf16, #tpu.memory_space<vmem>>, %arg2: memref<4x8xbf16, #tpu.memory_space<vmem>>, %arg3: memref<32x8xbf16, #tpu.memory_space<vmem>>, %arg4: memref<1x1x8xf32, #tpu.memory_space<vmem>>, %arg5: memref<1x1x8xf32, #tpu.memory_space<vmem>>) attributes {dimension_semantics = [#tpu.dimension_semantics<parallel>], iteration_bounds = array<i64: 1>, scalar_prefetch = 0 : i64, scratch_operands = 0 : i64, tpu.core_type = #tpu.core_type<tc>, window_params = [{transform_indices = @transform_0, window_bounds = array<i64: 32, 4>}, {pipeline_mode = #tpu.pipeline_mode<synchronous>, transform_indices = @transform_1, window_bounds = array<i64: 4, 8>}, {transform_indices = @transform_2, window_bounds = array<i64: 32, 8>}, {transform_indices = @transform_3, window_bounds = array<i64: 1, 1, 8>}, {transform_indices = @transform_4, window_bounds = array<i64: 1, 1, 8>}]} {
    %cst = arith.constant 0.000000e+00 : f32
    %0 = vector.broadcast %cst : f32 to vector<32x8xf32>
    %c0 = arith.constant 0 : index
    %c0_0 = arith.constant 0 : index
    %1 = vector.load %arg1[%c0, %c0_0] : memref<32x4xbf16, #tpu.memory_space<vmem>>, vector<32x4xbf16>
    %c0_1 = arith.constant 0 : index
    %c0_2 = arith.constant 0 : index
    %2 = vector.load %arg2[%c0_1, %c0_2] : memref<4x8xbf16, #tpu.memory_space<vmem>>, vector<4x8xbf16>
    %cst_3 = arith.constant dense<0.000000e+00> : vector<32x8xf32>
    %3 = tpu.matmul %1, %2, %cst_3 {dimension_numbers = #tpu.dot_dimension_numbers<[1], [0], [0], [1], [0, 0, 1, 1], [], []>} : vector<32x4xbf16>, vector<4x8xbf16>, vector<32x8xf32> -> vector<32x8xf32>
    %4 = arith.addf %0, %3 : vector<32x8xf32>
    %5 = arith.truncf %4 : vector<32x8xf32> to vector<32x8xbf16>
    %c0_4 = arith.constant 0 : index
    %c0_5 = arith.constant 0 : index
    %6 = vector.load %arg3[%c0_4, %c0_5] : memref<32x8xbf16, #tpu.memory_space<vmem>>, vector<32x8xbf16>
    tpu.vector_store %arg3[%c0_4, %c0_5], %5 {strides = array<i32>} : memref<32x8xbf16, #tpu.memory_space<vmem>>, vector<32x8xbf16>,
    %cst_6 = arith.constant dense<0.000000e+00> : vector<8xf32>
    %7 = vector.multi_reduction <add>, %4, %cst_6 [0] : vector<32x8xf32> to vector<8xf32>
    %8 = vector.shape_cast %7 : vector<8xf32> to vector<1x8xf32>
    %9 = vector.shape_cast %8 : vector<1x8xf32> to vector<1x1x8xf32>
    %c0_7 = arith.constant 0 : index
    %c0_8 = arith.constant 0 : index
    %c0_9 = arith.constant 0 : index
    %10 = vector.load %arg4[%c0_7, %c0_8, %c0_9] : memref<1x1x8xf32, #tpu.memory_space<vmem>>, vector<1x1x8xf32>
    tpu.vector_store %arg4[%c0_7, %c0_8, %c0_9], %9 {strides = array<i32>} : memref<1x1x8xf32, #tpu.memory_space<vmem>>, vector<1x1x8xf32>,
    %11 = arith.mulf %4, %4 : vector<32x8xf32>
    %cst_10 = arith.constant dense<0.000000e+00> : vector<8xf32>
    %12 = vector.multi_reduction <add>, %11, %cst_10 [0] : vector<32x8xf32> to vector<8xf32>
    %13 = vector.shape_cast %12 : vector<8xf32> to vector<1x8xf32>
    %14 = vector.shape_cast %13 : vector<1x8xf32> to vector<1x1x8xf32>
    %c0_11 = arith.constant 0 : index
    %c0_12 = arith.constant 0 : index
    %c0_13 = arith.constant 0 : index
    %15 = vector.load %arg5[%c0_11, %c0_12, %c0_13] : memref<1x1x8xf32, #tpu.memory_space<vmem>>, vector<1x1x8xf32>
    tpu.vector_store %arg5[%c0_11, %c0_12, %c0_13], %14 {strides = array<i32>} : memref<1x1x8xf32, #tpu.memory_space<vmem>>, vector<1x1x8xf32>,
    return
  }
  func.func @transform_0(%arg0: i32) -> (i32, i32) {
    %c0_i32 = arith.constant 0 : i32
    %c0_i32_0 = arith.constant 0 : i32
    return %arg0, %c0_i32 : i32, i32
  }
  func.func @transform_1(%arg0: i32) -> (i32, i32) {
    %c0_i32 = arith.constant 0 : i32
    %c0_i32_0 = arith.constant 0 : i32
    %c0_i32_1 = arith.constant 0 : i32
    return %c0_i32, %c0_i32_0 : i32, i32
  }
  func.func @transform_2(%arg0: i32) -> (i32, i32) {
    %c0_i32 = arith.constant 0 : i32
    %c0_i32_0 = arith.constant 0 : i32
    return %arg0, %c0_i32 : i32, i32
  }
  func.func @transform_3(%arg0: i32) -> (i32, i32, i32) {
    %c0_i32 = arith.constant 0 : i32
    %c0_i32_0 = arith.constant 0 : i32
    %c0_i32_1 = arith.constant 0 : i32
    return %arg0, %c0_i32, %c0_i32_0 : i32, i32, i32
  }
  func.func @transform_4(%arg0: i32) -> (i32, i32, i32) {
    %c0_i32 = arith.constant 0 : i32
    %c0_i32_0 = arith.constant 0 : i32
    %c0_i32_1 = arith.constant 0 : i32
    return %arg0, %c0_i32, %c0_i32_0 : i32, i32, i32
  }
}

module attributes {stable_mosaic.version = 11 : i64} {
  func.func @_bn_silu_kernel(%arg0: i32, %arg1: memref<32x8xbf16, #tpu.memory_space<vmem>>, %arg2: memref<1x8xf32, #tpu.memory_space<vmem>>, %arg3: memref<1x8xf32, #tpu.memory_space<vmem>>, %arg4: memref<32x8xbf16, #tpu.memory_space<vmem>>) attributes {dimension_semantics = [#tpu.dimension_semantics<parallel>], iteration_bounds = array<i64: 1>, scalar_prefetch = 0 : i64, scratch_operands = 0 : i64, tpu.core_type = #tpu.core_type<tc>, window_params = [{transform_indices = @transform_0, window_bounds = array<i64: 32, 8>}, {pipeline_mode = #tpu.pipeline_mode<synchronous>, transform_indices = @transform_1, window_bounds = array<i64: 1, 8>}, {pipeline_mode = #tpu.pipeline_mode<synchronous>, transform_indices = @transform_2, window_bounds = array<i64: 1, 8>}, {transform_indices = @transform_3, window_bounds = array<i64: 32, 8>}]} {
    %c0 = arith.constant 0 : index
    %c0_0 = arith.constant 0 : index
    %0 = vector.load %arg1[%c0, %c0_0] : memref<32x8xbf16, #tpu.memory_space<vmem>>, vector<32x8xbf16>
    %1 = arith.extf %0 : vector<32x8xbf16> to vector<32x8xf32>
    %c0_1 = arith.constant 0 : index
    %c0_2 = arith.constant 0 : index
    %2 = vector.load %arg2[%c0_1, %c0_2] : memref<1x8xf32, #tpu.memory_space<vmem>>, vector<1x8xf32>
    %3 = vector.broadcast %2 : vector<1x8xf32> to vector<32x8xf32>
    %4 = arith.mulf %1, %3 : vector<32x8xf32>
    %c0_3 = arith.constant 0 : index
    %c0_4 = arith.constant 0 : index
    %5 = vector.load %arg3[%c0_3, %c0_4] : memref<1x8xf32, #tpu.memory_space<vmem>>, vector<1x8xf32>
    %6 = vector.broadcast %5 : vector<1x8xf32> to vector<32x8xf32>
    %7 = arith.addf %4, %6 : vector<32x8xf32>
    %cst = arith.constant 0.000000e+00 : f32
    %8 = vector.broadcast %cst : f32 to vector<32x8xf32>
    %9 = arith.subf %8, %7 : vector<32x8xf32>
    %10 = math.exp %9 : vector<32x8xf32>
    %cst_5 = arith.constant 1.000000e+00 : f32
    %11 = vector.broadcast %cst_5 : f32 to vector<32x8xf32>
    %12 = arith.addf %11, %10 : vector<32x8xf32>
    %13 = tpu.reciprocal %12 {approx = true} : vector<32x8xf32> -> vector<32x8xf32>
    %14 = arith.mulf %7, %13 : vector<32x8xf32>
    %15 = arith.truncf %14 : vector<32x8xf32> to vector<32x8xbf16>
    %c0_6 = arith.constant 0 : index
    %c0_7 = arith.constant 0 : index
    %16 = vector.load %arg4[%c0_6, %c0_7] : memref<32x8xbf16, #tpu.memory_space<vmem>>, vector<32x8xbf16>
    tpu.vector_store %arg4[%c0_6, %c0_7], %15 {strides = array<i32>} : memref<32x8xbf16, #tpu.memory_space<vmem>>, vector<32x8xbf16>,
    return
  }
  func.func @transform_0(%arg0: i32) -> (i32, i32) {
    %c0_i32 = arith.constant 0 : i32
    %c0_i32_0 = arith.constant 0 : i32
    return %arg0, %c0_i32 : i32, i32
  }
  func.func @transform_1(%arg0: i32) -> (i32, i32) {
    %c0_i32 = arith.constant 0 : i32
    %c0_i32_0 = arith.constant 0 : i32
    %c0_i32_1 = arith.constant 0 : i32
    return %c0_i32, %c0_i32_0 : i32, i32
  }
  func.func @transform_2(%arg0: i32) -> (i32, i32) {
    %c0_i32 = arith.constant 0 : i32
    %c0_i32_0 = arith.constant 0 : i32
    %c0_i32_1 = arith.constant 0 : i32
    return %c0_i32, %c0_i32_0 : i32, i32
  }
  func.func @transform_3(%arg0: i32) -> (i32, i32) {
    %c0_i32 = arith.constant 0 : i32
    %c0_i32_0 = arith.constant 0 : i32
    return %arg0, %c0_i32 : i32, i32
  }
}

module attributes {stable_mosaic.version = 11 : i64} {
  func.func @_conv_sum_kernel(%arg0: i32, %arg1: memref<32x4xbf16, #tpu.memory_space<vmem>>, %arg2: memref<4x2xbf16, #tpu.memory_space<vmem>>, %arg3: memref<32x2xbf16, #tpu.memory_space<vmem>>, %arg4: memref<1x1x2xf32, #tpu.memory_space<vmem>>, %arg5: memref<1x1x2xf32, #tpu.memory_space<vmem>>) attributes {dimension_semantics = [#tpu.dimension_semantics<parallel>], iteration_bounds = array<i64: 1>, scalar_prefetch = 0 : i64, scratch_operands = 0 : i64, tpu.core_type = #tpu.core_type<tc>, window_params = [{transform_indices = @transform_0, window_bounds = array<i64: 32, 4>}, {pipeline_mode = #tpu.pipeline_mode<synchronous>, transform_indices = @transform_1, window_bounds = array<i64: 4, 2>}, {transform_indices = @transform_2, window_bounds = array<i64: 32, 2>}, {transform_indices = @transform_3, window_bounds = array<i64: 1, 1, 2>}, {transform_indices = @transform_4, window_bounds = array<i64: 1, 1, 2>}]} {
    %cst = arith.constant 0.000000e+00 : f32
    %0 = vector.broadcast %cst : f32 to vector<32x2xf32>
    %c0 = arith.constant 0 : index
    %c0_0 = arith.constant 0 : index
    %1 = vector.load %arg1[%c0, %c0_0] : memref<32x4xbf16, #tpu.memory_space<vmem>>, vector<32x4xbf16>
    %c0_1 = arith.constant 0 : index
    %c0_2 = arith.constant 0 : index
    %2 = vector.load %arg2[%c0_1, %c0_2] : memref<4x2xbf16, #tpu.memory_space<vmem>>, vector<4x2xbf16>
    %cst_3 = arith.constant dense<0.000000e+00> : vector<32x2xf32>
    %3 = tpu.matmul %1, %2, %cst_3 {dimension_numbers = #tpu.dot_dimension_numbers<[1], [0], [0], [1], [0, 0, 1, 1], [], []>} : vector<32x4xbf16>, vector<4x2xbf16>, vector<32x2xf32> -> vector<32x2xf32>
    %4 = arith.addf %0, %3 : vector<32x2xf32>
    %5 = arith.truncf %4 : vector<32x2xf32> to vector<32x2xbf16>
    %c0_4 = arith.constant 0 : index
    %c0_5 = arith.constant 0 : index
    %6 = vector.load %arg3[%c0_4, %c0_5] : memref<32x2xbf16, #tpu.memory_space<vmem>>, vector<32x2xbf16>
    tpu.vector_store %arg3[%c0_4, %c0_5], %5 {strides = array<i32>} : memref<32x2xbf16, #tpu.memory_space<vmem>>, vector<32x2xbf16>,
    %cst_6 = arith.constant dense<0.000000e+00> : vector<2xf32>
    %7 = vector.multi_reduction <add>, %4, %cst_6 [0] : vector<32x2xf32> to vector<2xf32>
    %8 = vector.shape_cast %7 : vector<2xf32> to vector<1x2xf32>
    %9 = vector.shape_cast %8 : vector<1x2xf32> to vector<1x1x2xf32>
    %c0_7 = arith.constant 0 : index
    %c0_8 = arith.constant 0 : index
    %c0_9 = arith.constant 0 : index
    %10 = vector.load %arg4[%c0_7, %c0_8, %c0_9] : memref<1x1x2xf32, #tpu.memory_space<vmem>>, vector<1x1x2xf32>
    tpu.vector_store %arg4[%c0_7, %c0_8, %c0_9], %9 {strides = array<i32>} : memref<1x1x2xf32, #tpu.memory_space<vmem>>, vector<1x1x2xf32>,
    %11 = arith.mulf %4, %4 : vector<32x2xf32>
    %cst_10 = arith.constant dense<0.000000e+00> : vector<2xf32>
    %12 = vector.multi_reduction <add>, %11, %cst_10 [0] : vector<32x2xf32> to vector<2xf32>
    %13 = vector.shape_cast %12 : vector<2xf32> to vector<1x2xf32>
    %14 = vector.shape_cast %13 : vector<1x2xf32> to vector<1x1x2xf32>
    %c0_11 = arith.constant 0 : index
    %c0_12 = arith.constant 0 : index
    %c0_13 = arith.constant 0 : index
    %15 = vector.load %arg5[%c0_11, %c0_12, %c0_13] : memref<1x1x2xf32, #tpu.memory_space<vmem>>, vector<1x1x2xf32>
    tpu.vector_store %arg5[%c0_11, %c0_12, %c0_13], %14 {strides = array<i32>} : memref<1x1x2xf32, #tpu.memory_space<vmem>>, vector<1x1x2xf32>,
    return
  }
  func.func @transform_0(%arg0: i32) -> (i32, i32) {
    %c0_i32 = arith.constant 0 : i32
    %c0_i32_0 = arith.constant 0 : i32
    return %arg0, %c0_i32 : i32, i32
  }
  func.func @transform_1(%arg0: i32) -> (i32, i32) {
    %c0_i32 = arith.constant 0 : i32
    %c0_i32_0 = arith.constant 0 : i32
    %c0_i32_1 = arith.constant 0 : i32
    return %c0_i32, %c0_i32_0 : i32, i32
  }
  func.func @transform_2(%arg0: i32) -> (i32, i32) {
    %c0_i32 = arith.constant 0 : i32
    %c0_i32_0 = arith.constant 0 : i32
    return %arg0, %c0_i32 : i32, i32
  }
  func.func @transform_3(%arg0: i32) -> (i32, i32, i32) {
    %c0_i32 = arith.constant 0 : i32
    %c0_i32_0 = arith.constant 0 : i32
    %c0_i32_1 = arith.constant 0 : i32
    return %arg0, %c0_i32, %c0_i32_0 : i32, i32, i32
  }
  func.func @transform_4(%arg0: i32) -> (i32, i32, i32) {
    %c0_i32 = arith.constant 0 : i32
    %c0_i32_0 = arith.constant 0 : i32
    %c0_i32_1 = arith.constant 0 : i32
    return %arg0, %c0_i32, %c0_i32_0 : i32, i32, i32
  }
}

module attributes {stable_mosaic.version = 11 : i64} {
  func.func @_bn_silu_kernel(%arg0: i32, %arg1: memref<32x2xbf16, #tpu.memory_space<vmem>>, %arg2: memref<1x2xf32, #tpu.memory_space<vmem>>, %arg3: memref<1x2xf32, #tpu.memory_space<vmem>>, %arg4: memref<32x2xbf16, #tpu.memory_space<vmem>>) attributes {dimension_semantics = [#tpu.dimension_semantics<parallel>], iteration_bounds = array<i64: 1>, scalar_prefetch = 0 : i64, scratch_operands = 0 : i64, tpu.core_type = #tpu.core_type<tc>, window_params = [{transform_indices = @transform_0, window_bounds = array<i64: 32, 2>}, {pipeline_mode = #tpu.pipeline_mode<synchronous>, transform_indices = @transform_1, window_bounds = array<i64: 1, 2>}, {pipeline_mode = #tpu.pipeline_mode<synchronous>, transform_indices = @transform_2, window_bounds = array<i64: 1, 2>}, {transform_indices = @transform_3, window_bounds = array<i64: 32, 2>}]} {
    %c0 = arith.constant 0 : index
    %c0_0 = arith.constant 0 : index
    %0 = vector.load %arg1[%c0, %c0_0] : memref<32x2xbf16, #tpu.memory_space<vmem>>, vector<32x2xbf16>
    %1 = arith.extf %0 : vector<32x2xbf16> to vector<32x2xf32>
    %c0_1 = arith.constant 0 : index
    %c0_2 = arith.constant 0 : index
    %2 = vector.load %arg2[%c0_1, %c0_2] : memref<1x2xf32, #tpu.memory_space<vmem>>, vector<1x2xf32>
    %3 = vector.broadcast %2 : vector<1x2xf32> to vector<32x2xf32>
    %4 = arith.mulf %1, %3 : vector<32x2xf32>
    %c0_3 = arith.constant 0 : index
    %c0_4 = arith.constant 0 : index
    %5 = vector.load %arg3[%c0_3, %c0_4] : memref<1x2xf32, #tpu.memory_space<vmem>>, vector<1x2xf32>
    %6 = vector.broadcast %5 : vector<1x2xf32> to vector<32x2xf32>
    %7 = arith.addf %4, %6 : vector<32x2xf32>
    %cst = arith.constant 0.000000e+00 : f32
    %8 = vector.broadcast %cst : f32 to vector<32x2xf32>
    %9 = arith.subf %8, %7 : vector<32x2xf32>
    %10 = math.exp %9 : vector<32x2xf32>
    %cst_5 = arith.constant 1.000000e+00 : f32
    %11 = vector.broadcast %cst_5 : f32 to vector<32x2xf32>
    %12 = arith.addf %11, %10 : vector<32x2xf32>
    %13 = tpu.reciprocal %12 {approx = true} : vector<32x2xf32> -> vector<32x2xf32>
    %14 = arith.mulf %7, %13 : vector<32x2xf32>
    %15 = arith.truncf %14 : vector<32x2xf32> to vector<32x2xbf16>
    %c0_6 = arith.constant 0 : index
    %c0_7 = arith.constant 0 : index
    %16 = vector.load %arg4[%c0_6, %c0_7] : memref<32x2xbf16, #tpu.memory_space<vmem>>, vector<32x2xbf16>
    tpu.vector_store %arg4[%c0_6, %c0_7], %15 {strides = array<i32>} : memref<32x2xbf16, #tpu.memory_space<vmem>>, vector<32x2xbf16>,
    return
  }
  func.func @transform_0(%arg0: i32) -> (i32, i32) {
    %c0_i32 = arith.constant 0 : i32
    %c0_i32_0 = arith.constant 0 : i32
    return %arg0, %c0_i32 : i32, i32
  }
  func.func @transform_1(%arg0: i32) -> (i32, i32) {
    %c0_i32 = arith.constant 0 : i32
    %c0_i32_0 = arith.constant 0 : i32
    %c0_i32_1 = arith.constant 0 : i32
    return %c0_i32, %c0_i32_0 : i32, i32
  }
  func.func @transform_2(%arg0: i32) -> (i32, i32) {
    %c0_i32 = arith.constant 0 : i32
    %c0_i32_0 = arith.constant 0 : i32
    %c0_i32_1 = arith.constant 0 : i32
    return %c0_i32, %c0_i32_0 : i32, i32
  }
  func.func @transform_3(%arg0: i32) -> (i32, i32) {
    %c0_i32 = arith.constant 0 : i32
    %c0_i32_0 = arith.constant 0 : i32
    return %arg0, %c0_i32 : i32, i32
  }
}

module attributes {stable_mosaic.version = 11 : i64} {
  func.func @_conv_sum_kernel(%arg0: i32, %arg1: memref<2x16x2xbf16, #tpu.memory_space<vmem>>, %arg2: memref<3x2x2xbf16, #tpu.memory_space<vmem>>, %arg3: memref<32x2xbf16, #tpu.memory_space<vmem>>, %arg4: memref<1x1x2xf32, #tpu.memory_space<vmem>>, %arg5: memref<1x1x2xf32, #tpu.memory_space<vmem>>, %arg6: memref<2x18x2xbf16, #tpu.memory_space<vmem>>) attributes {dimension_semantics = [#tpu.dimension_semantics<parallel>], iteration_bounds = array<i64: 1>, scalar_prefetch = 0 : i64, scratch_operands = 1 : i64, tpu.core_type = #tpu.core_type<tc>, window_params = [{transform_indices = @transform_0, window_bounds = array<i64: 2, 16, 2>}, {pipeline_mode = #tpu.pipeline_mode<synchronous>, transform_indices = @transform_1, window_bounds = array<i64: 3, 2, 2>}, {transform_indices = @transform_2, window_bounds = array<i64: 32, 2>}, {transform_indices = @transform_3, window_bounds = array<i64: 1, 1, 2>}, {transform_indices = @transform_4, window_bounds = array<i64: 1, 1, 2>}]} {
    %cst = arith.constant 0.000000e+00 : f32
    %0 = vector.broadcast %cst : f32 to vector<32x2xf32>
    %cst_0 = arith.constant 0.000000e+00 : bf16
    %1 = vector.broadcast %cst_0 : bf16 to vector<2x1x2xbf16>
    %c0 = arith.constant 0 : index
    %c0_1 = arith.constant 0 : index
    %c0_2 = arith.constant 0 : index
    %2 = vector.load %arg6[%c0, %c0_1, %c0_2] : memref<2x18x2xbf16, #tpu.memory_space<vmem>>, vector<2x1x2xbf16>
    tpu.vector_store %arg6[%c0, %c0_1, %c0_2], %1 {strides = array<i32>} : memref<2x18x2xbf16, #tpu.memory_space<vmem>>, vector<2x1x2xbf16>,
    %c0_3 = arith.constant 0 : index
    %c17 = arith.constant 17 : index
    %c0_4 = arith.constant 0 : index
    %3 = vector.load %arg6[%c0_3, %c17, %c0_4] : memref<2x18x2xbf16, #tpu.memory_space<vmem>>, vector<2x1x2xbf16>
    tpu.vector_store %arg6[%c0_3, %c17, %c0_4], %1 {strides = array<i32>} : memref<2x18x2xbf16, #tpu.memory_space<vmem>>, vector<2x1x2xbf16>,
    %c0_5 = arith.constant 0 : index
    %c0_6 = arith.constant 0 : index
    %c0_7 = arith.constant 0 : index
    %4 = vector.load %arg1[%c0_5, %c0_6, %c0_7] : memref<2x16x2xbf16, #tpu.memory_space<vmem>>, vector<2x16x2xbf16>
    %c0_8 = arith.constant 0 : index
    %c1 = arith.constant 1 : index
    %c0_9 = arith.constant 0 : index
    %5 = vector.load %arg6[%c0_8, %c1, %c0_9] : memref<2x18x2xbf16, #tpu.memory_space<vmem>>, vector<2x16x2xbf16>
    tpu.vector_store %arg6[%c0_8, %c1, %c0_9], %4 {strides = array<i32>} : memref<2x18x2xbf16, #tpu.memory_space<vmem>>, vector<2x16x2xbf16>,
    %c0_10 = arith.constant 0 : index
    %c0_11 = arith.constant 0 : index
    %c0_12 = arith.constant 0 : index
    %6 = vector.load %arg6[%c0_10, %c0_11, %c0_12] : memref<2x18x2xbf16, #tpu.memory_space<vmem>>, vector<2x16x2xbf16>
    %7 = vector.shape_cast %6 : vector<2x16x2xbf16> to vector<32x2xbf16>
    %c0_13 = arith.constant 0 : index
    %c0_14 = arith.constant 0 : index
    %c0_15 = arith.constant 0 : index
    %8 = vector.load %arg2[%c0_13, %c0_14, %c0_15] : memref<3x2x2xbf16, #tpu.memory_space<vmem>>, vector<1x2x2xbf16>
    %9 = vector.shape_cast %8 : vector<1x2x2xbf16> to vector<2x2xbf16>
    %cst_16 = arith.constant dense<0.000000e+00> : vector<32x2xf32>
    %10 = tpu.matmul %7, %9, %cst_16 {dimension_numbers = #tpu.dot_dimension_numbers<[1], [0], [0], [1], [0, 0, 1, 1], [], []>} : vector<32x2xbf16>, vector<2x2xbf16>, vector<32x2xf32> -> vector<32x2xf32>
    %11 = arith.addf %0, %10 : vector<32x2xf32>
    %c0_17 = arith.constant 0 : index
    %c1_18 = arith.constant 1 : index
    %c0_19 = arith.constant 0 : index
    %12 = vector.load %arg6[%c0_17, %c1_18, %c0_19] : memref<2x18x2xbf16, #tpu.memory_space<vmem>>, vector<2x16x2xbf16>
    %13 = vector.shape_cast %12 : vector<2x16x2xbf16> to vector<32x2xbf16>
    %c1_20 = arith.constant 1 : index
    %c0_21 = arith.constant 0 : index
    %c0_22 = arith.constant 0 : index
    %14 = vector.load %arg2[%c1_20, %c0_21, %c0_22] : memref<3x2x2xbf16, #tpu.memory_space<vmem>>, vector<1x2x2xbf16>
    %15 = vector.shape_cast %14 : vector<1x2x2xbf16> to vector<2x2xbf16>
    %cst_23 = arith.constant dense<0.000000e+00> : vector<32x2xf32>
    %16 = tpu.matmul %13, %15, %cst_23 {dimension_numbers = #tpu.dot_dimension_numbers<[1], [0], [0], [1], [0, 0, 1, 1], [], []>} : vector<32x2xbf16>, vector<2x2xbf16>, vector<32x2xf32> -> vector<32x2xf32>
    %17 = arith.addf %11, %16 : vector<32x2xf32>
    %c0_24 = arith.constant 0 : index
    %c2 = arith.constant 2 : index
    %c0_25 = arith.constant 0 : index
    %18 = vector.load %arg6[%c0_24, %c2, %c0_25] : memref<2x18x2xbf16, #tpu.memory_space<vmem>>, vector<2x16x2xbf16>
    %19 = vector.shape_cast %18 : vector<2x16x2xbf16> to vector<32x2xbf16>
    %c2_26 = arith.constant 2 : index
    %c0_27 = arith.constant 0 : index
    %c0_28 = arith.constant 0 : index
    %20 = vector.load %arg2[%c2_26, %c0_27, %c0_28] : memref<3x2x2xbf16, #tpu.memory_space<vmem>>, vector<1x2x2xbf16>
    %21 = vector.shape_cast %20 : vector<1x2x2xbf16> to vector<2x2xbf16>
    %cst_29 = arith.constant dense<0.000000e+00> : vector<32x2xf32>
    %22 = tpu.matmul %19, %21, %cst_29 {dimension_numbers = #tpu.dot_dimension_numbers<[1], [0], [0], [1], [0, 0, 1, 1], [], []>} : vector<32x2xbf16>, vector<2x2xbf16>, vector<32x2xf32> -> vector<32x2xf32>
    %23 = arith.addf %17, %22 : vector<32x2xf32>
    %24 = arith.truncf %23 : vector<32x2xf32> to vector<32x2xbf16>
    %c0_30 = arith.constant 0 : index
    %c0_31 = arith.constant 0 : index
    %25 = vector.load %arg3[%c0_30, %c0_31] : memref<32x2xbf16, #tpu.memory_space<vmem>>, vector<32x2xbf16>
    tpu.vector_store %arg3[%c0_30, %c0_31], %24 {strides = array<i32>} : memref<32x2xbf16, #tpu.memory_space<vmem>>, vector<32x2xbf16>,
    %cst_32 = arith.constant dense<0.000000e+00> : vector<2xf32>
    %26 = vector.multi_reduction <add>, %23, %cst_32 [0] : vector<32x2xf32> to vector<2xf32>
    %27 = vector.shape_cast %26 : vector<2xf32> to vector<1x2xf32>
    %28 = vector.shape_cast %27 : vector<1x2xf32> to vector<1x1x2xf32>
    %c0_33 = arith.constant 0 : index
    %c0_34 = arith.constant 0 : index
    %c0_35 = arith.constant 0 : index
    %29 = vector.load %arg4[%c0_33, %c0_34, %c0_35] : memref<1x1x2xf32, #tpu.memory_space<vmem>>, vector<1x1x2xf32>
    tpu.vector_store %arg4[%c0_33, %c0_34, %c0_35], %28 {strides = array<i32>} : memref<1x1x2xf32, #tpu.memory_space<vmem>>, vector<1x1x2xf32>,
    %30 = arith.mulf %23, %23 : vector<32x2xf32>
    %cst_36 = arith.constant dense<0.000000e+00> : vector<2xf32>
    %31 = vector.multi_reduction <add>, %30, %cst_36 [0] : vector<32x2xf32> to vector<2xf32>
    %32 = vector.shape_cast %31 : vector<2xf32> to vector<1x2xf32>
    %33 = vector.shape_cast %32 : vector<1x2xf32> to vector<1x1x2xf32>
    %c0_37 = arith.constant 0 : index
    %c0_38 = arith.constant 0 : index
    %c0_39 = arith.constant 0 : index
    %34 = vector.load %arg5[%c0_37, %c0_38, %c0_39] : memref<1x1x2xf32, #tpu.memory_space<vmem>>, vector<1x1x2xf32>
    tpu.vector_store %arg5[%c0_37, %c0_38, %c0_39], %33 {strides = array<i32>} : memref<1x1x2xf32, #tpu.memory_space<vmem>>, vector<1x1x2xf32>,
    return
  }
  func.func @transform_0(%arg0: i32) -> (i32, i32, i32) {
    %c0_i32 = arith.constant 0 : i32
    %c0_i32_0 = arith.constant 0 : i32
    %c0_i32_1 = arith.constant 0 : i32
    return %arg0, %c0_i32, %c0_i32_0 : i32, i32, i32
  }
  func.func @transform_1(%arg0: i32) -> (i32, i32, i32) {
    %c0_i32 = arith.constant 0 : i32
    %c0_i32_0 = arith.constant 0 : i32
    %c0_i32_1 = arith.constant 0 : i32
    %c0_i32_2 = arith.constant 0 : i32
    return %c0_i32, %c0_i32_0, %c0_i32_1 : i32, i32, i32
  }
  func.func @transform_2(%arg0: i32) -> (i32, i32) {
    %c0_i32 = arith.constant 0 : i32
    %c0_i32_0 = arith.constant 0 : i32
    return %arg0, %c0_i32 : i32, i32
  }
  func.func @transform_3(%arg0: i32) -> (i32, i32, i32) {
    %c0_i32 = arith.constant 0 : i32
    %c0_i32_0 = arith.constant 0 : i32
    %c0_i32_1 = arith.constant 0 : i32
    return %arg0, %c0_i32, %c0_i32_0 : i32, i32, i32
  }
  func.func @transform_4(%arg0: i32) -> (i32, i32, i32) {
    %c0_i32 = arith.constant 0 : i32
    %c0_i32_0 = arith.constant 0 : i32
    %c0_i32_1 = arith.constant 0 : i32
    return %arg0, %c0_i32, %c0_i32_0 : i32, i32, i32
  }
}

module attributes {stable_mosaic.version = 11 : i64} {
  func.func @_conv_sum_kernel(%arg0: i32, %arg1: memref<2x16x2xbf16, #tpu.memory_space<vmem>>, %arg2: memref<32x2xbf16, #tpu.memory_space<vmem>>, %arg3: memref<3x2x2xbf16, #tpu.memory_space<vmem>>, %arg4: memref<2x2xbf16, #tpu.memory_space<vmem>>, %arg5: memref<32x2xbf16, #tpu.memory_space<vmem>>, %arg6: memref<1x1x2xf32, #tpu.memory_space<vmem>>, %arg7: memref<1x1x2xf32, #tpu.memory_space<vmem>>, %arg8: memref<2x18x2xbf16, #tpu.memory_space<vmem>>) attributes {dimension_semantics = [#tpu.dimension_semantics<parallel>], iteration_bounds = array<i64: 1>, scalar_prefetch = 0 : i64, scratch_operands = 1 : i64, tpu.core_type = #tpu.core_type<tc>, window_params = [{transform_indices = @transform_0, window_bounds = array<i64: 2, 16, 2>}, {transform_indices = @transform_1, window_bounds = array<i64: 32, 2>}, {pipeline_mode = #tpu.pipeline_mode<synchronous>, transform_indices = @transform_2, window_bounds = array<i64: 3, 2, 2>}, {pipeline_mode = #tpu.pipeline_mode<synchronous>, transform_indices = @transform_3, window_bounds = array<i64: 2, 2>}, {transform_indices = @transform_4, window_bounds = array<i64: 32, 2>}, {transform_indices = @transform_5, window_bounds = array<i64: 1, 1, 2>}, {transform_indices = @transform_6, window_bounds = array<i64: 1, 1, 2>}]} {
    %cst = arith.constant 0.000000e+00 : f32
    %0 = vector.broadcast %cst : f32 to vector<32x2xf32>
    %cst_0 = arith.constant 0.000000e+00 : bf16
    %1 = vector.broadcast %cst_0 : bf16 to vector<2x1x2xbf16>
    %c0 = arith.constant 0 : index
    %c0_1 = arith.constant 0 : index
    %c0_2 = arith.constant 0 : index
    %2 = vector.load %arg8[%c0, %c0_1, %c0_2] : memref<2x18x2xbf16, #tpu.memory_space<vmem>>, vector<2x1x2xbf16>
    tpu.vector_store %arg8[%c0, %c0_1, %c0_2], %1 {strides = array<i32>} : memref<2x18x2xbf16, #tpu.memory_space<vmem>>, vector<2x1x2xbf16>,
    %c0_3 = arith.constant 0 : index
    %c17 = arith.constant 17 : index
    %c0_4 = arith.constant 0 : index
    %3 = vector.load %arg8[%c0_3, %c17, %c0_4] : memref<2x18x2xbf16, #tpu.memory_space<vmem>>, vector<2x1x2xbf16>
    tpu.vector_store %arg8[%c0_3, %c17, %c0_4], %1 {strides = array<i32>} : memref<2x18x2xbf16, #tpu.memory_space<vmem>>, vector<2x1x2xbf16>,
    %c0_5 = arith.constant 0 : index
    %c0_6 = arith.constant 0 : index
    %c0_7 = arith.constant 0 : index
    %4 = vector.load %arg1[%c0_5, %c0_6, %c0_7] : memref<2x16x2xbf16, #tpu.memory_space<vmem>>, vector<2x16x2xbf16>
    %c0_8 = arith.constant 0 : index
    %c1 = arith.constant 1 : index
    %c0_9 = arith.constant 0 : index
    %5 = vector.load %arg8[%c0_8, %c1, %c0_9] : memref<2x18x2xbf16, #tpu.memory_space<vmem>>, vector<2x16x2xbf16>
    tpu.vector_store %arg8[%c0_8, %c1, %c0_9], %4 {strides = array<i32>} : memref<2x18x2xbf16, #tpu.memory_space<vmem>>, vector<2x16x2xbf16>,
    %c0_10 = arith.constant 0 : index
    %c0_11 = arith.constant 0 : index
    %c0_12 = arith.constant 0 : index
    %6 = vector.load %arg8[%c0_10, %c0_11, %c0_12] : memref<2x18x2xbf16, #tpu.memory_space<vmem>>, vector<2x16x2xbf16>
    %7 = vector.shape_cast %6 : vector<2x16x2xbf16> to vector<32x2xbf16>
    %c0_13 = arith.constant 0 : index
    %c0_14 = arith.constant 0 : index
    %c0_15 = arith.constant 0 : index
    %8 = vector.load %arg3[%c0_13, %c0_14, %c0_15] : memref<3x2x2xbf16, #tpu.memory_space<vmem>>, vector<1x2x2xbf16>
    %9 = vector.shape_cast %8 : vector<1x2x2xbf16> to vector<2x2xbf16>
    %cst_16 = arith.constant dense<0.000000e+00> : vector<32x2xf32>
    %10 = tpu.matmul %7, %9, %cst_16 {dimension_numbers = #tpu.dot_dimension_numbers<[1], [0], [0], [1], [0, 0, 1, 1], [], []>} : vector<32x2xbf16>, vector<2x2xbf16>, vector<32x2xf32> -> vector<32x2xf32>
    %11 = arith.addf %0, %10 : vector<32x2xf32>
    %c0_17 = arith.constant 0 : index
    %c1_18 = arith.constant 1 : index
    %c0_19 = arith.constant 0 : index
    %12 = vector.load %arg8[%c0_17, %c1_18, %c0_19] : memref<2x18x2xbf16, #tpu.memory_space<vmem>>, vector<2x16x2xbf16>
    %13 = vector.shape_cast %12 : vector<2x16x2xbf16> to vector<32x2xbf16>
    %c1_20 = arith.constant 1 : index
    %c0_21 = arith.constant 0 : index
    %c0_22 = arith.constant 0 : index
    %14 = vector.load %arg3[%c1_20, %c0_21, %c0_22] : memref<3x2x2xbf16, #tpu.memory_space<vmem>>, vector<1x2x2xbf16>
    %15 = vector.shape_cast %14 : vector<1x2x2xbf16> to vector<2x2xbf16>
    %cst_23 = arith.constant dense<0.000000e+00> : vector<32x2xf32>
    %16 = tpu.matmul %13, %15, %cst_23 {dimension_numbers = #tpu.dot_dimension_numbers<[1], [0], [0], [1], [0, 0, 1, 1], [], []>} : vector<32x2xbf16>, vector<2x2xbf16>, vector<32x2xf32> -> vector<32x2xf32>
    %17 = arith.addf %11, %16 : vector<32x2xf32>
    %c0_24 = arith.constant 0 : index
    %c2 = arith.constant 2 : index
    %c0_25 = arith.constant 0 : index
    %18 = vector.load %arg8[%c0_24, %c2, %c0_25] : memref<2x18x2xbf16, #tpu.memory_space<vmem>>, vector<2x16x2xbf16>
    %19 = vector.shape_cast %18 : vector<2x16x2xbf16> to vector<32x2xbf16>
    %c2_26 = arith.constant 2 : index
    %c0_27 = arith.constant 0 : index
    %c0_28 = arith.constant 0 : index
    %20 = vector.load %arg3[%c2_26, %c0_27, %c0_28] : memref<3x2x2xbf16, #tpu.memory_space<vmem>>, vector<1x2x2xbf16>
    %21 = vector.shape_cast %20 : vector<1x2x2xbf16> to vector<2x2xbf16>
    %cst_29 = arith.constant dense<0.000000e+00> : vector<32x2xf32>
    %22 = tpu.matmul %19, %21, %cst_29 {dimension_numbers = #tpu.dot_dimension_numbers<[1], [0], [0], [1], [0, 0, 1, 1], [], []>} : vector<32x2xbf16>, vector<2x2xbf16>, vector<32x2xf32> -> vector<32x2xf32>
    %23 = arith.addf %17, %22 : vector<32x2xf32>
    %c0_30 = arith.constant 0 : index
    %c0_31 = arith.constant 0 : index
    %24 = vector.load %arg2[%c0_30, %c0_31] : memref<32x2xbf16, #tpu.memory_space<vmem>>, vector<32x2xbf16>
    %c0_32 = arith.constant 0 : index
    %c0_33 = arith.constant 0 : index
    %25 = vector.load %arg4[%c0_32, %c0_33] : memref<2x2xbf16, #tpu.memory_space<vmem>>, vector<2x2xbf16>
    %cst_34 = arith.constant dense<0.000000e+00> : vector<32x2xf32>
    %26 = tpu.matmul %24, %25, %cst_34 {dimension_numbers = #tpu.dot_dimension_numbers<[1], [0], [0], [1], [0, 0, 1, 1], [], []>} : vector<32x2xbf16>, vector<2x2xbf16>, vector<32x2xf32> -> vector<32x2xf32>
    %27 = arith.addf %23, %26 : vector<32x2xf32>
    %28 = arith.truncf %27 : vector<32x2xf32> to vector<32x2xbf16>
    %c0_35 = arith.constant 0 : index
    %c0_36 = arith.constant 0 : index
    %29 = vector.load %arg5[%c0_35, %c0_36] : memref<32x2xbf16, #tpu.memory_space<vmem>>, vector<32x2xbf16>
    tpu.vector_store %arg5[%c0_35, %c0_36], %28 {strides = array<i32>} : memref<32x2xbf16, #tpu.memory_space<vmem>>, vector<32x2xbf16>,
    %cst_37 = arith.constant dense<0.000000e+00> : vector<2xf32>
    %30 = vector.multi_reduction <add>, %27, %cst_37 [0] : vector<32x2xf32> to vector<2xf32>
    %31 = vector.shape_cast %30 : vector<2xf32> to vector<1x2xf32>
    %32 = vector.shape_cast %31 : vector<1x2xf32> to vector<1x1x2xf32>
    %c0_38 = arith.constant 0 : index
    %c0_39 = arith.constant 0 : index
    %c0_40 = arith.constant 0 : index
    %33 = vector.load %arg6[%c0_38, %c0_39, %c0_40] : memref<1x1x2xf32, #tpu.memory_space<vmem>>, vector<1x1x2xf32>
    tpu.vector_store %arg6[%c0_38, %c0_39, %c0_40], %32 {strides = array<i32>} : memref<1x1x2xf32, #tpu.memory_space<vmem>>, vector<1x1x2xf32>,
    %34 = arith.mulf %27, %27 : vector<32x2xf32>
    %cst_41 = arith.constant dense<0.000000e+00> : vector<2xf32>
    %35 = vector.multi_reduction <add>, %34, %cst_41 [0] : vector<32x2xf32> to vector<2xf32>
    %36 = vector.shape_cast %35 : vector<2xf32> to vector<1x2xf32>
    %37 = vector.shape_cast %36 : vector<1x2xf32> to vector<1x1x2xf32>
    %c0_42 = arith.constant 0 : index
    %c0_43 = arith.constant 0 : index
    %c0_44 = arith.constant 0 : index
    %38 = vector.load %arg7[%c0_42, %c0_43, %c0_44] : memref<1x1x2xf32, #tpu.memory_space<vmem>>, vector<1x1x2xf32>
    tpu.vector_store %arg7[%c0_42, %c0_43, %c0_44], %37 {strides = array<i32>} : memref<1x1x2xf32, #tpu.memory_space<vmem>>, vector<1x1x2xf32>,
    return
  }
  func.func @transform_0(%arg0: i32) -> (i32, i32, i32) {
    %c0_i32 = arith.constant 0 : i32
    %c0_i32_0 = arith.constant 0 : i32
    %c0_i32_1 = arith.constant 0 : i32
    return %arg0, %c0_i32, %c0_i32_0 : i32, i32, i32
  }
  func.func @transform_1(%arg0: i32) -> (i32, i32) {
    %c0_i32 = arith.constant 0 : i32
    %c0_i32_0 = arith.constant 0 : i32
    return %arg0, %c0_i32 : i32, i32
  }
  func.func @transform_2(%arg0: i32) -> (i32, i32, i32) {
    %c0_i32 = arith.constant 0 : i32
    %c0_i32_0 = arith.constant 0 : i32
    %c0_i32_1 = arith.constant 0 : i32
    %c0_i32_2 = arith.constant 0 : i32
    return %c0_i32, %c0_i32_0, %c0_i32_1 : i32, i32, i32
  }
  func.func @transform_3(%arg0: i32) -> (i32, i32) {
    %c0_i32 = arith.constant 0 : i32
    %c0_i32_0 = arith.constant 0 : i32
    %c0_i32_1 = arith.constant 0 : i32
    return %c0_i32, %c0_i32_0 : i32, i32
  }
  func.func @transform_4(%arg0: i32) -> (i32, i32) {
    %c0_i32 = arith.constant 0 : i32
    %c0_i32_0 = arith.constant 0 : i32
    return %arg0, %c0_i32 : i32, i32
  }
  func.func @transform_5(%arg0: i32) -> (i32, i32, i32) {
    %c0_i32 = arith.constant 0 : i32
    %c0_i32_0 = arith.constant 0 : i32
    %c0_i32_1 = arith.constant 0 : i32
    return %arg0, %c0_i32, %c0_i32_0 : i32, i32, i32
  }
  func.func @transform_6(%arg0: i32) -> (i32, i32, i32) {
    %c0_i32 = arith.constant 0 : i32
    %c0_i32_0 = arith.constant 0 : i32
    %c0_i32_1 = arith.constant 0 : i32
    return %arg0, %c0_i32, %c0_i32_0 : i32, i32, i32
  }
}

module attributes {stable_mosaic.version = 11 : i64} {
  func.func @_conv_sum_kernel(%arg0: i32, %arg1: memref<32x2xbf16, #tpu.memory_space<vmem>>, %arg2: memref<32x2xbf16, #tpu.memory_space<vmem>>, %arg3: memref<32x4xbf16, #tpu.memory_space<vmem>>, %arg4: memref<2x4xbf16, #tpu.memory_space<vmem>>, %arg5: memref<2x4xbf16, #tpu.memory_space<vmem>>, %arg6: memref<4x4xbf16, #tpu.memory_space<vmem>>, %arg7: memref<32x4xbf16, #tpu.memory_space<vmem>>, %arg8: memref<1x1x4xf32, #tpu.memory_space<vmem>>, %arg9: memref<1x1x4xf32, #tpu.memory_space<vmem>>) attributes {dimension_semantics = [#tpu.dimension_semantics<parallel>], iteration_bounds = array<i64: 1>, scalar_prefetch = 0 : i64, scratch_operands = 0 : i64, tpu.core_type = #tpu.core_type<tc>, window_params = [{transform_indices = @transform_0, window_bounds = array<i64: 32, 2>}, {transform_indices = @transform_1, window_bounds = array<i64: 32, 2>}, {transform_indices = @transform_2, window_bounds = array<i64: 32, 4>}, {pipeline_mode = #tpu.pipeline_mode<synchronous>, transform_indices = @transform_3, window_bounds = array<i64: 2, 4>}, {pipeline_mode = #tpu.pipeline_mode<synchronous>, transform_indices = @transform_4, window_bounds = array<i64: 2, 4>}, {pipeline_mode = #tpu.pipeline_mode<synchronous>, transform_indices = @transform_5, window_bounds = array<i64: 4, 4>}, {transform_indices = @transform_6, window_bounds = array<i64: 32, 4>}, {transform_indices = @transform_7, window_bounds = array<i64: 1, 1, 4>}, {transform_indices = @transform_8, window_bounds = array<i64: 1, 1, 4>}]} {
    %cst = arith.constant 0.000000e+00 : f32
    %0 = vector.broadcast %cst : f32 to vector<32x4xf32>
    %c0 = arith.constant 0 : index
    %c0_0 = arith.constant 0 : index
    %1 = vector.load %arg1[%c0, %c0_0] : memref<32x2xbf16, #tpu.memory_space<vmem>>, vector<32x2xbf16>
    %c0_1 = arith.constant 0 : index
    %c0_2 = arith.constant 0 : index
    %2 = vector.load %arg4[%c0_1, %c0_2] : memref<2x4xbf16, #tpu.memory_space<vmem>>, vector<2x4xbf16>
    %cst_3 = arith.constant dense<0.000000e+00> : vector<32x4xf32>
    %3 = tpu.matmul %1, %2, %cst_3 {dimension_numbers = #tpu.dot_dimension_numbers<[1], [0], [0], [1], [0, 0, 1, 1], [], []>} : vector<32x2xbf16>, vector<2x4xbf16>, vector<32x4xf32> -> vector<32x4xf32>
    %4 = arith.addf %0, %3 : vector<32x4xf32>
    %c0_4 = arith.constant 0 : index
    %c0_5 = arith.constant 0 : index
    %5 = vector.load %arg2[%c0_4, %c0_5] : memref<32x2xbf16, #tpu.memory_space<vmem>>, vector<32x2xbf16>
    %c0_6 = arith.constant 0 : index
    %c0_7 = arith.constant 0 : index
    %6 = vector.load %arg5[%c0_6, %c0_7] : memref<2x4xbf16, #tpu.memory_space<vmem>>, vector<2x4xbf16>
    %cst_8 = arith.constant dense<0.000000e+00> : vector<32x4xf32>
    %7 = tpu.matmul %5, %6, %cst_8 {dimension_numbers = #tpu.dot_dimension_numbers<[1], [0], [0], [1], [0, 0, 1, 1], [], []>} : vector<32x2xbf16>, vector<2x4xbf16>, vector<32x4xf32> -> vector<32x4xf32>
    %8 = arith.addf %4, %7 : vector<32x4xf32>
    %c0_9 = arith.constant 0 : index
    %c0_10 = arith.constant 0 : index
    %9 = vector.load %arg3[%c0_9, %c0_10] : memref<32x4xbf16, #tpu.memory_space<vmem>>, vector<32x4xbf16>
    %c0_11 = arith.constant 0 : index
    %c0_12 = arith.constant 0 : index
    %10 = vector.load %arg6[%c0_11, %c0_12] : memref<4x4xbf16, #tpu.memory_space<vmem>>, vector<4x4xbf16>
    %cst_13 = arith.constant dense<0.000000e+00> : vector<32x4xf32>
    %11 = tpu.matmul %9, %10, %cst_13 {dimension_numbers = #tpu.dot_dimension_numbers<[1], [0], [0], [1], [0, 0, 1, 1], [], []>} : vector<32x4xbf16>, vector<4x4xbf16>, vector<32x4xf32> -> vector<32x4xf32>
    %12 = arith.addf %8, %11 : vector<32x4xf32>
    %13 = arith.truncf %12 : vector<32x4xf32> to vector<32x4xbf16>
    %c0_14 = arith.constant 0 : index
    %c0_15 = arith.constant 0 : index
    %14 = vector.load %arg7[%c0_14, %c0_15] : memref<32x4xbf16, #tpu.memory_space<vmem>>, vector<32x4xbf16>
    tpu.vector_store %arg7[%c0_14, %c0_15], %13 {strides = array<i32>} : memref<32x4xbf16, #tpu.memory_space<vmem>>, vector<32x4xbf16>,
    %cst_16 = arith.constant dense<0.000000e+00> : vector<4xf32>
    %15 = vector.multi_reduction <add>, %12, %cst_16 [0] : vector<32x4xf32> to vector<4xf32>
    %16 = vector.shape_cast %15 : vector<4xf32> to vector<1x4xf32>
    %17 = vector.shape_cast %16 : vector<1x4xf32> to vector<1x1x4xf32>
    %c0_17 = arith.constant 0 : index
    %c0_18 = arith.constant 0 : index
    %c0_19 = arith.constant 0 : index
    %18 = vector.load %arg8[%c0_17, %c0_18, %c0_19] : memref<1x1x4xf32, #tpu.memory_space<vmem>>, vector<1x1x4xf32>
    tpu.vector_store %arg8[%c0_17, %c0_18, %c0_19], %17 {strides = array<i32>} : memref<1x1x4xf32, #tpu.memory_space<vmem>>, vector<1x1x4xf32>,
    %19 = arith.mulf %12, %12 : vector<32x4xf32>
    %cst_20 = arith.constant dense<0.000000e+00> : vector<4xf32>
    %20 = vector.multi_reduction <add>, %19, %cst_20 [0] : vector<32x4xf32> to vector<4xf32>
    %21 = vector.shape_cast %20 : vector<4xf32> to vector<1x4xf32>
    %22 = vector.shape_cast %21 : vector<1x4xf32> to vector<1x1x4xf32>
    %c0_21 = arith.constant 0 : index
    %c0_22 = arith.constant 0 : index
    %c0_23 = arith.constant 0 : index
    %23 = vector.load %arg9[%c0_21, %c0_22, %c0_23] : memref<1x1x4xf32, #tpu.memory_space<vmem>>, vector<1x1x4xf32>
    tpu.vector_store %arg9[%c0_21, %c0_22, %c0_23], %22 {strides = array<i32>} : memref<1x1x4xf32, #tpu.memory_space<vmem>>, vector<1x1x4xf32>,
    return
  }
  func.func @transform_0(%arg0: i32) -> (i32, i32) {
    %c0_i32 = arith.constant 0 : i32
    %c0_i32_0 = arith.constant 0 : i32
    return %arg0, %c0_i32 : i32, i32
  }
  func.func @transform_1(%arg0: i32) -> (i32, i32) {
    %c0_i32 = arith.constant 0 : i32
    %c0_i32_0 = arith.constant 0 : i32
    return %arg0, %c0_i32 : i32, i32
  }
  func.func @transform_2(%arg0: i32) -> (i32, i32) {
    %c0_i32 = arith.constant 0 : i32
    %c0_i32_0 = arith.constant 0 : i32
    return %arg0, %c0_i32 : i32, i32
  }
  func.func @transform_3(%arg0: i32) -> (i32, i32) {
    %c0_i32 = arith.constant 0 : i32
    %c0_i32_0 = arith.constant 0 : i32
    %c0_i32_1 = arith.constant 0 : i32
    return %c0_i32, %c0_i32_0 : i32, i32
  }
  func.func @transform_4(%arg0: i32) -> (i32, i32) {
    %c0_i32 = arith.constant 0 : i32
    %c0_i32_0 = arith.constant 0 : i32
    %c0_i32_1 = arith.constant 0 : i32
    return %c0_i32, %c0_i32_0 : i32, i32
  }
  func.func @transform_5(%arg0: i32) -> (i32, i32) {
    %c0_i32 = arith.constant 0 : i32
    %c0_i32_0 = arith.constant 0 : i32
    %c0_i32_1 = arith.constant 0 : i32
    return %c0_i32, %c0_i32_0 : i32, i32
  }
  func.func @transform_6(%arg0: i32) -> (i32, i32) {
    %c0_i32 = arith.constant 0 : i32
    %c0_i32_0 = arith.constant 0 : i32
    return %arg0, %c0_i32 : i32, i32
  }
  func.func @transform_7(%arg0: i32) -> (i32, i32, i32) {
    %c0_i32 = arith.constant 0 : i32
    %c0_i32_0 = arith.constant 0 : i32
    %c0_i32_1 = arith.constant 0 : i32
    return %arg0, %c0_i32, %c0_i32_0 : i32, i32, i32
  }
  func.func @transform_8(%arg0: i32) -> (i32, i32, i32) {
    %c0_i32 = arith.constant 0 : i32
    %c0_i32_0 = arith.constant 0 : i32
    %c0_i32_1 = arith.constant 0 : i32
    return %arg0, %c0_i32, %c0_i32_0 : i32, i32, i32
  }
}

module attributes {stable_mosaic.version = 11 : i64} {
  func.func @_bn_silu_kernel(%arg0: i32, %arg1: memref<32x4xbf16, #tpu.memory_space<vmem>>, %arg2: memref<1x4xf32, #tpu.memory_space<vmem>>, %arg3: memref<1x4xf32, #tpu.memory_space<vmem>>, %arg4: memref<32x4xbf16, #tpu.memory_space<vmem>>) attributes {dimension_semantics = [#tpu.dimension_semantics<parallel>], iteration_bounds = array<i64: 1>, scalar_prefetch = 0 : i64, scratch_operands = 0 : i64, tpu.core_type = #tpu.core_type<tc>, window_params = [{transform_indices = @transform_0, window_bounds = array<i64: 32, 4>}, {pipeline_mode = #tpu.pipeline_mode<synchronous>, transform_indices = @transform_1, window_bounds = array<i64: 1, 4>}, {pipeline_mode = #tpu.pipeline_mode<synchronous>, transform_indices = @transform_2, window_bounds = array<i64: 1, 4>}, {transform_indices = @transform_3, window_bounds = array<i64: 32, 4>}]} {
    %c0 = arith.constant 0 : index
    %c0_0 = arith.constant 0 : index
    %0 = vector.load %arg1[%c0, %c0_0] : memref<32x4xbf16, #tpu.memory_space<vmem>>, vector<32x4xbf16>
    %1 = arith.extf %0 : vector<32x4xbf16> to vector<32x4xf32>
    %c0_1 = arith.constant 0 : index
    %c0_2 = arith.constant 0 : index
    %2 = vector.load %arg2[%c0_1, %c0_2] : memref<1x4xf32, #tpu.memory_space<vmem>>, vector<1x4xf32>
    %3 = vector.broadcast %2 : vector<1x4xf32> to vector<32x4xf32>
    %4 = arith.mulf %1, %3 : vector<32x4xf32>
    %c0_3 = arith.constant 0 : index
    %c0_4 = arith.constant 0 : index
    %5 = vector.load %arg3[%c0_3, %c0_4] : memref<1x4xf32, #tpu.memory_space<vmem>>, vector<1x4xf32>
    %6 = vector.broadcast %5 : vector<1x4xf32> to vector<32x4xf32>
    %7 = arith.addf %4, %6 : vector<32x4xf32>
    %cst = arith.constant 0.000000e+00 : f32
    %8 = vector.broadcast %cst : f32 to vector<32x4xf32>
    %9 = arith.subf %8, %7 : vector<32x4xf32>
    %10 = math.exp %9 : vector<32x4xf32>
    %cst_5 = arith.constant 1.000000e+00 : f32
    %11 = vector.broadcast %cst_5 : f32 to vector<32x4xf32>
    %12 = arith.addf %11, %10 : vector<32x4xf32>
    %13 = tpu.reciprocal %12 {approx = true} : vector<32x4xf32> -> vector<32x4xf32>
    %14 = arith.mulf %7, %13 : vector<32x4xf32>
    %15 = arith.truncf %14 : vector<32x4xf32> to vector<32x4xbf16>
    %c0_6 = arith.constant 0 : index
    %c0_7 = arith.constant 0 : index
    %16 = vector.load %arg4[%c0_6, %c0_7] : memref<32x4xbf16, #tpu.memory_space<vmem>>, vector<32x4xbf16>
    tpu.vector_store %arg4[%c0_6, %c0_7], %15 {strides = array<i32>} : memref<32x4xbf16, #tpu.memory_space<vmem>>, vector<32x4xbf16>,
    return
  }
  func.func @transform_0(%arg0: i32) -> (i32, i32) {
    %c0_i32 = arith.constant 0 : i32
    %c0_i32_0 = arith.constant 0 : i32
    return %arg0, %c0_i32 : i32, i32
  }
  func.func @transform_1(%arg0: i32) -> (i32, i32) {
    %c0_i32 = arith.constant 0 : i32
    %c0_i32_0 = arith.constant 0 : i32
    %c0_i32_1 = arith.constant 0 : i32
    return %c0_i32, %c0_i32_0 : i32, i32
  }
  func.func @transform_2(%arg0: i32) -> (i32, i32) {
    %c0_i32 = arith.constant 0 : i32
    %c0_i32_0 = arith.constant 0 : i32
    %c0_i32_1 = arith.constant 0 : i32
    return %c0_i32, %c0_i32_0 : i32, i32
  }
  func.func @transform_3(%arg0: i32) -> (i32, i32) {
    %c0_i32 = arith.constant 0 : i32
    %c0_i32_0 = arith.constant 0 : i32
    return %arg0, %c0_i32 : i32, i32
  }
}

module attributes {stable_mosaic.version = 11 : i64} {
  func.func @_conv_sum_kernel(%arg0: i32, %arg1: memref<2x16x4xbf16, #tpu.memory_space<vmem>>, %arg2: memref<3x4x4xbf16, #tpu.memory_space<vmem>>, %arg3: memref<32x4xbf16, #tpu.memory_space<vmem>>, %arg4: memref<1x1x4xf32, #tpu.memory_space<vmem>>, %arg5: memref<1x1x4xf32, #tpu.memory_space<vmem>>, %arg6: memref<2x18x4xbf16, #tpu.memory_space<vmem>>) attributes {dimension_semantics = [#tpu.dimension_semantics<parallel>], iteration_bounds = array<i64: 1>, scalar_prefetch = 0 : i64, scratch_operands = 1 : i64, tpu.core_type = #tpu.core_type<tc>, window_params = [{transform_indices = @transform_0, window_bounds = array<i64: 2, 16, 4>}, {pipeline_mode = #tpu.pipeline_mode<synchronous>, transform_indices = @transform_1, window_bounds = array<i64: 3, 4, 4>}, {transform_indices = @transform_2, window_bounds = array<i64: 32, 4>}, {transform_indices = @transform_3, window_bounds = array<i64: 1, 1, 4>}, {transform_indices = @transform_4, window_bounds = array<i64: 1, 1, 4>}]} {
    %cst = arith.constant 0.000000e+00 : f32
    %0 = vector.broadcast %cst : f32 to vector<32x4xf32>
    %cst_0 = arith.constant 0.000000e+00 : bf16
    %1 = vector.broadcast %cst_0 : bf16 to vector<2x1x4xbf16>
    %c0 = arith.constant 0 : index
    %c0_1 = arith.constant 0 : index
    %c0_2 = arith.constant 0 : index
    %2 = vector.load %arg6[%c0, %c0_1, %c0_2] : memref<2x18x4xbf16, #tpu.memory_space<vmem>>, vector<2x1x4xbf16>
    tpu.vector_store %arg6[%c0, %c0_1, %c0_2], %1 {strides = array<i32>} : memref<2x18x4xbf16, #tpu.memory_space<vmem>>, vector<2x1x4xbf16>,
    %c0_3 = arith.constant 0 : index
    %c17 = arith.constant 17 : index
    %c0_4 = arith.constant 0 : index
    %3 = vector.load %arg6[%c0_3, %c17, %c0_4] : memref<2x18x4xbf16, #tpu.memory_space<vmem>>, vector<2x1x4xbf16>
    tpu.vector_store %arg6[%c0_3, %c17, %c0_4], %1 {strides = array<i32>} : memref<2x18x4xbf16, #tpu.memory_space<vmem>>, vector<2x1x4xbf16>,
    %c0_5 = arith.constant 0 : index
    %c0_6 = arith.constant 0 : index
    %c0_7 = arith.constant 0 : index
    %4 = vector.load %arg1[%c0_5, %c0_6, %c0_7] : memref<2x16x4xbf16, #tpu.memory_space<vmem>>, vector<2x16x4xbf16>
    %c0_8 = arith.constant 0 : index
    %c1 = arith.constant 1 : index
    %c0_9 = arith.constant 0 : index
    %5 = vector.load %arg6[%c0_8, %c1, %c0_9] : memref<2x18x4xbf16, #tpu.memory_space<vmem>>, vector<2x16x4xbf16>
    tpu.vector_store %arg6[%c0_8, %c1, %c0_9], %4 {strides = array<i32>} : memref<2x18x4xbf16, #tpu.memory_space<vmem>>, vector<2x16x4xbf16>,
    %c0_10 = arith.constant 0 : index
    %c0_11 = arith.constant 0 : index
    %c0_12 = arith.constant 0 : index
    %6 = vector.load %arg6[%c0_10, %c0_11, %c0_12] : memref<2x18x4xbf16, #tpu.memory_space<vmem>>, vector<2x16x4xbf16>
    %7 = vector.shape_cast %6 : vector<2x16x4xbf16> to vector<32x4xbf16>
    %c0_13 = arith.constant 0 : index
    %c0_14 = arith.constant 0 : index
    %c0_15 = arith.constant 0 : index
    %8 = vector.load %arg2[%c0_13, %c0_14, %c0_15] : memref<3x4x4xbf16, #tpu.memory_space<vmem>>, vector<1x4x4xbf16>
    %9 = vector.shape_cast %8 : vector<1x4x4xbf16> to vector<4x4xbf16>
    %cst_16 = arith.constant dense<0.000000e+00> : vector<32x4xf32>
    %10 = tpu.matmul %7, %9, %cst_16 {dimension_numbers = #tpu.dot_dimension_numbers<[1], [0], [0], [1], [0, 0, 1, 1], [], []>} : vector<32x4xbf16>, vector<4x4xbf16>, vector<32x4xf32> -> vector<32x4xf32>
    %11 = arith.addf %0, %10 : vector<32x4xf32>
    %c0_17 = arith.constant 0 : index
    %c1_18 = arith.constant 1 : index
    %c0_19 = arith.constant 0 : index
    %12 = vector.load %arg6[%c0_17, %c1_18, %c0_19] : memref<2x18x4xbf16, #tpu.memory_space<vmem>>, vector<2x16x4xbf16>
    %13 = vector.shape_cast %12 : vector<2x16x4xbf16> to vector<32x4xbf16>
    %c1_20 = arith.constant 1 : index
    %c0_21 = arith.constant 0 : index
    %c0_22 = arith.constant 0 : index
    %14 = vector.load %arg2[%c1_20, %c0_21, %c0_22] : memref<3x4x4xbf16, #tpu.memory_space<vmem>>, vector<1x4x4xbf16>
    %15 = vector.shape_cast %14 : vector<1x4x4xbf16> to vector<4x4xbf16>
    %cst_23 = arith.constant dense<0.000000e+00> : vector<32x4xf32>
    %16 = tpu.matmul %13, %15, %cst_23 {dimension_numbers = #tpu.dot_dimension_numbers<[1], [0], [0], [1], [0, 0, 1, 1], [], []>} : vector<32x4xbf16>, vector<4x4xbf16>, vector<32x4xf32> -> vector<32x4xf32>
    %17 = arith.addf %11, %16 : vector<32x4xf32>
    %c0_24 = arith.constant 0 : index
    %c2 = arith.constant 2 : index
    %c0_25 = arith.constant 0 : index
    %18 = vector.load %arg6[%c0_24, %c2, %c0_25] : memref<2x18x4xbf16, #tpu.memory_space<vmem>>, vector<2x16x4xbf16>
    %19 = vector.shape_cast %18 : vector<2x16x4xbf16> to vector<32x4xbf16>
    %c2_26 = arith.constant 2 : index
    %c0_27 = arith.constant 0 : index
    %c0_28 = arith.constant 0 : index
    %20 = vector.load %arg2[%c2_26, %c0_27, %c0_28] : memref<3x4x4xbf16, #tpu.memory_space<vmem>>, vector<1x4x4xbf16>
    %21 = vector.shape_cast %20 : vector<1x4x4xbf16> to vector<4x4xbf16>
    %cst_29 = arith.constant dense<0.000000e+00> : vector<32x4xf32>
    %22 = tpu.matmul %19, %21, %cst_29 {dimension_numbers = #tpu.dot_dimension_numbers<[1], [0], [0], [1], [0, 0, 1, 1], [], []>} : vector<32x4xbf16>, vector<4x4xbf16>, vector<32x4xf32> -> vector<32x4xf32>
    %23 = arith.addf %17, %22 : vector<32x4xf32>
    %24 = arith.truncf %23 : vector<32x4xf32> to vector<32x4xbf16>
    %c0_30 = arith.constant 0 : index
    %c0_31 = arith.constant 0 : index
    %25 = vector.load %arg3[%c0_30, %c0_31] : memref<32x4xbf16, #tpu.memory_space<vmem>>, vector<32x4xbf16>
    tpu.vector_store %arg3[%c0_30, %c0_31], %24 {strides = array<i32>} : memref<32x4xbf16, #tpu.memory_space<vmem>>, vector<32x4xbf16>,
    %cst_32 = arith.constant dense<0.000000e+00> : vector<4xf32>
    %26 = vector.multi_reduction <add>, %23, %cst_32 [0] : vector<32x4xf32> to vector<4xf32>
    %27 = vector.shape_cast %26 : vector<4xf32> to vector<1x4xf32>
    %28 = vector.shape_cast %27 : vector<1x4xf32> to vector<1x1x4xf32>
    %c0_33 = arith.constant 0 : index
    %c0_34 = arith.constant 0 : index
    %c0_35 = arith.constant 0 : index
    %29 = vector.load %arg4[%c0_33, %c0_34, %c0_35] : memref<1x1x4xf32, #tpu.memory_space<vmem>>, vector<1x1x4xf32>
    tpu.vector_store %arg4[%c0_33, %c0_34, %c0_35], %28 {strides = array<i32>} : memref<1x1x4xf32, #tpu.memory_space<vmem>>, vector<1x1x4xf32>,
    %30 = arith.mulf %23, %23 : vector<32x4xf32>
    %cst_36 = arith.constant dense<0.000000e+00> : vector<4xf32>
    %31 = vector.multi_reduction <add>, %30, %cst_36 [0] : vector<32x4xf32> to vector<4xf32>
    %32 = vector.shape_cast %31 : vector<4xf32> to vector<1x4xf32>
    %33 = vector.shape_cast %32 : vector<1x4xf32> to vector<1x1x4xf32>
    %c0_37 = arith.constant 0 : index
    %c0_38 = arith.constant 0 : index
    %c0_39 = arith.constant 0 : index
    %34 = vector.load %arg5[%c0_37, %c0_38, %c0_39] : memref<1x1x4xf32, #tpu.memory_space<vmem>>, vector<1x1x4xf32>
    tpu.vector_store %arg5[%c0_37, %c0_38, %c0_39], %33 {strides = array<i32>} : memref<1x1x4xf32, #tpu.memory_space<vmem>>, vector<1x1x4xf32>,
    return
  }
  func.func @transform_0(%arg0: i32) -> (i32, i32, i32) {
    %c0_i32 = arith.constant 0 : i32
    %c0_i32_0 = arith.constant 0 : i32
    %c0_i32_1 = arith.constant 0 : i32
    return %arg0, %c0_i32, %c0_i32_0 : i32, i32, i32
  }
  func.func @transform_1(%arg0: i32) -> (i32, i32, i32) {
    %c0_i32 = arith.constant 0 : i32
    %c0_i32_0 = arith.constant 0 : i32
    %c0_i32_1 = arith.constant 0 : i32
    %c0_i32_2 = arith.constant 0 : i32
    return %c0_i32, %c0_i32_0, %c0_i32_1 : i32, i32, i32
  }
  func.func @transform_2(%arg0: i32) -> (i32, i32) {
    %c0_i32 = arith.constant 0 : i32
    %c0_i32_0 = arith.constant 0 : i32
    return %arg0, %c0_i32 : i32, i32
  }
  func.func @transform_3(%arg0: i32) -> (i32, i32, i32) {
    %c0_i32 = arith.constant 0 : i32
    %c0_i32_0 = arith.constant 0 : i32
    %c0_i32_1 = arith.constant 0 : i32
    return %arg0, %c0_i32, %c0_i32_0 : i32, i32, i32
  }
  func.func @transform_4(%arg0: i32) -> (i32, i32, i32) {
    %c0_i32 = arith.constant 0 : i32
    %c0_i32_0 = arith.constant 0 : i32
    %c0_i32_1 = arith.constant 0 : i32
    return %arg0, %c0_i32, %c0_i32_0 : i32, i32, i32
  }
}

module attributes {stable_mosaic.version = 11 : i64} {
  func.func @_conv_sum_kernel(%arg0: i32, %arg1: memref<32x8xbf16, #tpu.memory_space<vmem>>, %arg2: memref<32x4xbf16, #tpu.memory_space<vmem>>, %arg3: memref<32x4xbf16, #tpu.memory_space<vmem>>, %arg4: memref<8x8xbf16, #tpu.memory_space<vmem>>, %arg5: memref<4x8xbf16, #tpu.memory_space<vmem>>, %arg6: memref<4x8xbf16, #tpu.memory_space<vmem>>, %arg7: memref<32x8xf32, #tpu.memory_space<vmem>>) attributes {dimension_semantics = [#tpu.dimension_semantics<parallel>], iteration_bounds = array<i64: 1>, scalar_prefetch = 0 : i64, scratch_operands = 0 : i64, tpu.core_type = #tpu.core_type<tc>, window_params = [{transform_indices = @transform_0, window_bounds = array<i64: 32, 8>}, {transform_indices = @transform_1, window_bounds = array<i64: 32, 4>}, {transform_indices = @transform_2, window_bounds = array<i64: 32, 4>}, {pipeline_mode = #tpu.pipeline_mode<synchronous>, transform_indices = @transform_3, window_bounds = array<i64: 8, 8>}, {pipeline_mode = #tpu.pipeline_mode<synchronous>, transform_indices = @transform_4, window_bounds = array<i64: 4, 8>}, {pipeline_mode = #tpu.pipeline_mode<synchronous>, transform_indices = @transform_5, window_bounds = array<i64: 4, 8>}, {transform_indices = @transform_6, window_bounds = array<i64: 32, 8>}]} {
    %cst = arith.constant 0.000000e+00 : f32
    %0 = vector.broadcast %cst : f32 to vector<32x8xf32>
    %c0 = arith.constant 0 : index
    %c0_0 = arith.constant 0 : index
    %1 = vector.load %arg1[%c0, %c0_0] : memref<32x8xbf16, #tpu.memory_space<vmem>>, vector<32x8xbf16>
    %c0_1 = arith.constant 0 : index
    %c0_2 = arith.constant 0 : index
    %2 = vector.load %arg4[%c0_1, %c0_2] : memref<8x8xbf16, #tpu.memory_space<vmem>>, vector<8x8xbf16>
    %cst_3 = arith.constant dense<0.000000e+00> : vector<32x8xf32>
    %3 = tpu.matmul %1, %2, %cst_3 {dimension_numbers = #tpu.dot_dimension_numbers<[1], [0], [0], [1], [0, 0, 1, 1], [], []>} : vector<32x8xbf16>, vector<8x8xbf16>, vector<32x8xf32> -> vector<32x8xf32>
    %4 = arith.addf %0, %3 : vector<32x8xf32>
    %c0_4 = arith.constant 0 : index
    %c0_5 = arith.constant 0 : index
    %5 = vector.load %arg2[%c0_4, %c0_5] : memref<32x4xbf16, #tpu.memory_space<vmem>>, vector<32x4xbf16>
    %c0_6 = arith.constant 0 : index
    %c0_7 = arith.constant 0 : index
    %6 = vector.load %arg5[%c0_6, %c0_7] : memref<4x8xbf16, #tpu.memory_space<vmem>>, vector<4x8xbf16>
    %cst_8 = arith.constant dense<0.000000e+00> : vector<32x8xf32>
    %7 = tpu.matmul %5, %6, %cst_8 {dimension_numbers = #tpu.dot_dimension_numbers<[1], [0], [0], [1], [0, 0, 1, 1], [], []>} : vector<32x4xbf16>, vector<4x8xbf16>, vector<32x8xf32> -> vector<32x8xf32>
    %8 = arith.addf %4, %7 : vector<32x8xf32>
    %c0_9 = arith.constant 0 : index
    %c0_10 = arith.constant 0 : index
    %9 = vector.load %arg3[%c0_9, %c0_10] : memref<32x4xbf16, #tpu.memory_space<vmem>>, vector<32x4xbf16>
    %c0_11 = arith.constant 0 : index
    %c0_12 = arith.constant 0 : index
    %10 = vector.load %arg6[%c0_11, %c0_12] : memref<4x8xbf16, #tpu.memory_space<vmem>>, vector<4x8xbf16>
    %cst_13 = arith.constant dense<0.000000e+00> : vector<32x8xf32>
    %11 = tpu.matmul %9, %10, %cst_13 {dimension_numbers = #tpu.dot_dimension_numbers<[1], [0], [0], [1], [0, 0, 1, 1], [], []>} : vector<32x4xbf16>, vector<4x8xbf16>, vector<32x8xf32> -> vector<32x8xf32>
    %12 = arith.addf %8, %11 : vector<32x8xf32>
    %c0_14 = arith.constant 0 : index
    %c0_15 = arith.constant 0 : index
    %13 = vector.load %arg7[%c0_14, %c0_15] : memref<32x8xf32, #tpu.memory_space<vmem>>, vector<32x8xf32>
    tpu.vector_store %arg7[%c0_14, %c0_15], %12 {strides = array<i32>} : memref<32x8xf32, #tpu.memory_space<vmem>>, vector<32x8xf32>,
    return
  }
  func.func @transform_0(%arg0: i32) -> (i32, i32) {
    %c0_i32 = arith.constant 0 : i32
    %c0_i32_0 = arith.constant 0 : i32
    return %arg0, %c0_i32 : i32, i32
  }
  func.func @transform_1(%arg0: i32) -> (i32, i32) {
    %c0_i32 = arith.constant 0 : i32
    %c0_i32_0 = arith.constant 0 : i32
    return %arg0, %c0_i32 : i32, i32
  }
  func.func @transform_2(%arg0: i32) -> (i32, i32) {
    %c0_i32 = arith.constant 0 : i32
    %c0_i32_0 = arith.constant 0 : i32
    return %arg0, %c0_i32 : i32, i32
  }
  func.func @transform_3(%arg0: i32) -> (i32, i32) {
    %c0_i32 = arith.constant 0 : i32
    %c0_i32_0 = arith.constant 0 : i32
    %c0_i32_1 = arith.constant 0 : i32
    return %c0_i32, %c0_i32_0 : i32, i32
  }
  func.func @transform_4(%arg0: i32) -> (i32, i32) {
    %c0_i32 = arith.constant 0 : i32
    %c0_i32_0 = arith.constant 0 : i32
    %c0_i32_1 = arith.constant 0 : i32
    return %c0_i32, %c0_i32_0 : i32, i32
  }
  func.func @transform_5(%arg0: i32) -> (i32, i32) {
    %c0_i32 = arith.constant 0 : i32
    %c0_i32_0 = arith.constant 0 : i32
    %c0_i32_1 = arith.constant 0 : i32
    return %c0_i32, %c0_i32_0 : i32, i32
  }
  func.func @transform_6(%arg0: i32) -> (i32, i32) {
    %c0_i32 = arith.constant 0 : i32
    %c0_i32_0 = arith.constant 0 : i32
    return %arg0, %c0_i32 : i32, i32
  }
}

</mosaic_0001>

<bundles_post_ra>
// kernel: _lambda_.28
= control target key start
LH: loop header
LB: loop body
LE: loop exit
PB: predicated region body
PF: predicated region fallthrough
CT: control target
= control target key end

     0   :  { %vm84_vm0 = vcmask 60416   ;;  %s172_s0 = inlined_call_operand.vmem [shape: bf16[32,8], index: 0, kind: input, shape index: {}]   ;;  %s173_s1 = inlined_call_operand.vmem [shape: f32[1,8], index: 1, kind: input, shape index: {}]   ;;  %s174_s2 = inlined_call_operand.vmem [shape: f32[1,8], index: 2, kind: input, shape index: {}]   ;;  %s175_s3 = inlined_call_operand.vmem [shape: bf16[32,8], index: 3, kind: output, shape index: {}]  }
   0x1   :  { %v104_v0 = vld [vmem:[%s172_s0] sm:$0xff]   ;;  %v111_v4 = vld [vmem:[%s172_s0 + $0x8] sm:$0xff]  }
   0x2   :  { %v93_v1 = vld [vmem:[%s173_s1] ss:$0 sm:$0xff]  ;;  %v105_v2 = vunpack.c.l.bf16 %v104_v0  ;;  %v106_v3 = vunpack.c.h.bf16 %v104_v0  ;;  %v109_v6 = vunpack.c.l.bf16 %v111_v4  ;;  %v110_v7 = vunpack.c.h.bf16 %v111_v4 }
   0x3   :  { %v94_v5 = vld [vmem:[%s174_s2] ss:$0 sm:$0xff] }
   0x4   :  { %v29_v8 = vmul.f32 %v105_v2, %v93_v1  ;;  %v30_v9 = vmul.f32 %v106_v3, %v93_v1  ;;  %v31_v10 = vmul.f32 %v109_v6, %v93_v1  ;;  %v32_v11 = vmul.f32 %v110_v7, %v93_v1 }
   0x6   :  { %v40_v12 = vadd.f32 %v94_v5, %v29_v8  ;;  %v41_v13 = vadd.f32 %v94_v5, %v30_v9  ;;  %v42_v14 = vadd.f32 %v94_v5, %v31_v10  ;;  %v43_v15 = vadd.f32 %v94_v5, %v32_v11 }
   0x8   :  { %v44_v16 = vsub.f32 0.0, %v40_v12  ;;  %v45_v17 = vsub.f32 0.0, %v41_v13  ;;  %v46_v18 = vsub.f32 0.0, %v42_v14  ;;  %v47_v19 = vsub.f32 0.0, %v43_v15 }
   0xa   :  { %v48_v20 = vmul.f32 1.442695, %v44_v16  ;;  %v50_v21 = vmul.f32 1.442695, %v45_v17  ;;  %v52_v22 = vmul.f32 1.442695, %v46_v18 }
   0xb   :  { %v54_v23 = vmul.f32 1.442695, %v47_v19 }
   0xc   :  { %112 = vpow2.f32 %v48_v20 }
   0xd   :  { %114 = vpow2.f32 %v50_v21 }
   0xe   :  { %116 = vpow2.f32 %v52_v22 }
   0xf   :  { %118 = vpow2.f32 %v54_v23 }
  0x16   :  { %v113_v24 = vpop.eup %112 }
  0x17   :  { %v115_v25 = vpop.eup %114  ;;  %v56_v26 = vadd.f32 1.0, %v113_v24 }
  0x18   :  { %v117_v27 = vpop.eup %116  ;;  %v57_v28 = vadd.f32 1.0, %v115_v25 }
  0x19   :  { %v119_v29 = vpop.eup %118  ;;  %120 = vrcp.f32 %v56_v26  ;;  %v58_v30 = vadd.f32 1.0, %v117_v27 }
  0x1a   :  { %122 = vrcp.f32 %v57_v28  ;;  %v59_v31 = vadd.f32 1.0, %v119_v29 }
  0x1b   :  { %124 = vrcp.f32 %v58_v30 }
  0x1c   :  { %126 = vrcp.f32 %v59_v31 }
  0x23   :  { %v121_v32 = vpop.eup %120 }
  0x24   :  { %v123_v33 = vpop.eup %122  ;;  %v64_v34 = vmul.f32 %v121_v32, %v40_v12 }
  0x25   :  { %v125_v35 = vpop.eup %124  ;;  %v65_v36 = vmul.f32 %v123_v33, %v41_v13 }
  0x26   :  { %v127_v37 = vpop.eup %126  ;;  %v99_v38 = vpack.c.bf16 %v64_v34, %v64_v34  ;;  %v66_v39 = vmul.f32 %v125_v35, %v42_v14 }
  0x27   :  { %v100_v40 = vpack.c.bf16 %v65_v36, %v65_v36  ;;  %v67_v41 = vmul.f32 %v127_v37, %v43_v15 }
  0x28   :  { %85 = vst.msk [vmem:[%s175_s3] sm:$0xf] %vm84_vm0, %v99_v38  ;;  %v101_v42 = vpack.c.bf16 %v66_v39, %v66_v39 }
  0x29   :  { %86 = vst.msk [vmem:[%s175_s3 + $0x4] sm:$0xf] %vm84_vm0, %v100_v40  ;;  %v102_v43 = vpack.c.bf16 %v67_v41, %v67_v41 }
  0x2a   :  { %87 = vst.msk [vmem:[%s175_s3 + $0x8] sm:$0xf] %vm84_vm0, %v101_v42 }
  0x2b   :  { %88 = vst.msk [vmem:[%s175_s3 + $0xc] sm:$0xf] %vm84_vm0, %v102_v43 }

// kernel: _lambda_.27
= control target key start
LH: loop header
LB: loop body
LE: loop exit
PB: predicated region body
PF: predicated region fallthrough
CT: control target
= control target key end

     0   :  { %vm37_vm0 = vcmask 1041408   ;;  %vm30_vm1 = vcmask 31744   ;;  %vm106_vm2 = vcmask 60416   ;;  %vm111_vm3 = vcmask 64512   ;;  %s245_s1 = inlined_call_operand.vmem [shape: bf16[4,8], index: 1, kind: input, shape index: {}]   ;;  %s246_s0 = inlined_call_operand.vmem [shape: bf16[32,4], index: 0, kind: input, shape index: {}]   ;;  %s247_s2 = inlined_call_operand.vmem [shape: bf16[32,8], index: 2, kind: output, shape index: {0}]   ;;  %s248_s3 = inlined_call_operand.vmem [shape: f32[1,1,8], index: 3, kind: output, shape index: {1}]   ;;  %s249_s4 = inlined_call_operand.vmem [shape: f32[1,1,8], index: 4, kind: output, shape index: {2}]  }
   0x1   :  { %v19_v0 = vld [vmem:[%s245_s1] sm:$0x3]  ;;  %v180_v3 = vld [vmem:[%s246_s0 + $0x8] sm:$0xff]   ;;  %vm125_vm4 = vcmask 57344  }
   0x2   :  { %178 = vmatprep.subr.msk.bf16.mxu0 %vm37_vm0, %v19_v0  ;;  %v39_v1 = vsel %vm37_vm0, %v19_v0, 0  ;;  %v179_v2 = vld [vmem:[%s246_s0] sm:$0xff]  }
   0x3   :  { %173 = vmatpush3.bf16.msra.mxu0 %v39_v1  ;;  %174 = vmatprep.mubr.msk.bf16.mxu0 %vm30_vm1, %v179_v2 }
   0x6   :  { %175 = vmatmul.mubr.msk.bf16.vlgmr.msra.gmra.mrb[0].mxu0 %vm30_vm1, %v180_v3 }
  0xd9   :  { %v176_v4 = vpop.f32.mrb[0].mxu0 }
  0xda   :  { %v167_v5 = vpack.c.bf16 %v176_v4, %v176_v4  ;;  %v75_v6 = vpop.f32.mrb[1].mxu0  ;;  %v129_v10 = vmul.f32 %v176_v4, %v176_v4  ;;  %v115_v18 = vsel %vm111_vm3, %v176_v4, 0.0 }
  0xdb   :  { %v165_v7 = vpack.c.bf16 %v75_v6, %v75_v6  ;;  %v127_v8 = vmul.f32 %v75_v6, %v75_v6  ;;  %v177_v9 = vpop.f32.mrb[2].mxu0  ;;  %v112_v13 = vsel %vm111_vm3, %v75_v6, 0.0 }
  0xdc   :  { %109 = vst.msk [vmem:[%s247_s2 + $0x8] sm:$0xf] %vm106_vm2, %v167_v5  ;;  %v168_v11 = vpack.c.bf16 %v177_v9, %v177_v9  ;;  %v78_v12 = vpop.f32.mrb[3].mxu0  ;;  %v130_v20 = vmul.f32 %v177_v9, %v177_v9  ;;  %v134_v24 = vsel %vm111_vm3, %v129_v10, 0.0  ;;  %v117_v25 = vsel %vm111_vm3, %v177_v9, 0.0 }
  0xdd   :  { %107 = vst.msk [vmem:[%s247_s2] sm:$0xf] %vm106_vm2, %v165_v7  ;;  %v166_v14 = vpack.c.bf16 %v78_v12, %v78_v12  ;;  %v113_v15 = vsel %vm111_vm3, %v78_v12, 0.0  ;;  %v128_v16 = vmul.f32 %v78_v12, %v78_v12  ;;  %v131_v19 = vsel %vm111_vm3, %v127_v8, 0.0 }
  0xde   :  { %110 = vst.msk [vmem:[%s247_s2 + $0xc] sm:$0xf] %vm106_vm2, %v168_v11  ;;  %v114_v17 = vadd.f32 %v113_v15, %v112_v13  ;;  %v136_v28 = vsel %vm111_vm3, %v130_v20, 0.0 }
  0xdf   :  { %108 = vst.msk [vmem:[%s247_s2 + $0x4] sm:$0xf] %vm106_vm2, %v166_v14  ;;  %v132_v21 = vsel %vm111_vm3, %v128_v16, 0.0 }
  0xe0   :  { %v116_v22 = vadd.f32 %v115_v18, %v114_v17  ;;  %v133_v23 = vadd.f32 %v132_v21, %v131_v19 }
  0xe2   :  { %v118_v26 = vadd.f32 %v117_v25, %v116_v22  ;;  %v135_v27 = vadd.f32 %v134_v24, %v133_v23 }
  0xe4   :  { %v119_v29 = vrot.slane %v118_v26, 4  ;;  %v137_v30 = vadd.f32 %v136_v28, %v135_v27 }
  0xe6   :  { %v120_v31 = vadd.f32 %v119_v29, %v118_v26  ;;  %v138_v32 = vrot.slane %v137_v30, 4 }
  0xe8   :  { %v121_v33 = vrot.slane %v120_v31, 2  ;;  %v139_v34 = vadd.f32 %v138_v32, %v137_v30 }
  0xea   :  { %v122_v35 = vadd.f32 %v121_v33, %v120_v31  ;;  %v140_v36 = vrot.slane %v139_v34, 2 }
  0xec   :  { %v123_v37 = vrot.slane %v122_v35, 1  ;;  %v141_v38 = vadd.f32 %v140_v36, %v139_v34 }
  0xee   :  { %v124_v39 = vadd.f32 %v123_v37, %v122_v35  ;;  %v142_v40 = vrot.slane %v141_v38, 1 }
  0xf0   :  { %126 = vst.msk [vmem:[%s248_s3] sm:$0x1] %vm125_vm4, %v124_v39  ;;  %v143_v41 = vadd.f32 %v142_v40, %v141_v38 }
  0xf2   :  { %144 = vst.msk [vmem:[%s249_s4] sm:$0x1] %vm125_vm4, %v143_v41 }

// kernel: _lambda_.29
= control target key start
LH: loop header
LB: loop body
LE: loop exit
PB: predicated region body
PF: predicated region fallthrough
CT: control target
= control target key end

     0   :  { %vm37_vm0 = vcmask 1041408   ;;  %vm30_vm1 = vcmask 31744   ;;  %vm106_vm2 = vcmask 11264   ;;  %vm111_vm3 = vcmask 15360   ;;  %s245_s1 = inlined_call_operand.vmem [shape: bf16[4,2], index: 1, kind: input, shape index: {}]   ;;  %s246_s0 = inlined_call_operand.vmem [shape: bf16[32,4], index: 0, kind: input, shape index: {}]   ;;  %s247_s2 = inlined_call_operand.vmem [shape: bf16[32,2], index: 2, kind: output, shape index: {0}]   ;;  %s248_s3 = inlined_call_operand.vmem [shape: f32[1,1,2], index: 3, kind: output, shape index: {1}]   ;;  %s249_s4 = inlined_call_operand.vmem [shape: f32[1,1,2], index: 4, kind: output, shape index: {2}]  }
   0x1   :  { %v19_v0 = vld [vmem:[%s245_s1] sm:$0x3]  ;;  %v180_v3 = vld [vmem:[%s246_s0 + $0x8] sm:$0xff]   ;;  %vm125_vm4 = vcmask 8192  }
   0x2   :  { %178 = vmatprep.subr.msk.bf16.mxu0 %vm37_vm0, %v19_v0  ;;  %v39_v1 = vsel %vm37_vm0, %v19_v0, 0  ;;  %v179_v2 = vld [vmem:[%s246_s0] sm:$0xff]  }
   0x3   :  { %173 = vmatpush3.bf16.msra.mxu0 %v39_v1  ;;  %174 = vmatprep.mubr.msk.bf16.mxu0 %vm30_vm1, %v179_v2 }
   0x6   :  { %175 = vmatmul.mubr.msk.bf16.vlgmr.msra.gmra.mrb[0].mxu0 %vm30_vm1, %v180_v3 }
  0xd9   :  { %v176_v4 = vpop.f32.mrb[0].mxu0 }
  0xda   :  { %v167_v5 = vpack.c.bf16 %v176_v4, %v176_v4  ;;  %v75_v6 = vpop.f32.mrb[1].mxu0  ;;  %v129_v10 = vmul.f32 %v176_v4, %v176_v4  ;;  %v115_v18 = vsel %vm111_vm3, %v176_v4, 0.0 }
  0xdb   :  { %v165_v7 = vpack.c.bf16 %v75_v6, %v75_v6  ;;  %v127_v8 = vmul.f32 %v75_v6, %v75_v6  ;;  %v177_v9 = vpop.f32.mrb[2].mxu0  ;;  %v112_v13 = vsel %vm111_vm3, %v75_v6, 0.0 }
  0xdc   :  { %109 = vst.msk [vmem:[%s247_s2 + $0x8] sm:$0xf] %vm106_vm2, %v167_v5  ;;  %v168_v11 = vpack.c.bf16 %v177_v9, %v177_v9  ;;  %v78_v12 = vpop.f32.mrb[3].mxu0  ;;  %v130_v20 = vmul.f32 %v177_v9, %v177_v9  ;;  %v134_v24 = vsel %vm111_vm3, %v129_v10, 0.0  ;;  %v117_v25 = vsel %vm111_vm3, %v177_v9, 0.0 }
  0xdd   :  { %107 = vst.msk [vmem:[%s247_s2] sm:$0xf] %vm106_vm2, %v165_v7  ;;  %v166_v14 = vpack.c.bf16 %v78_v12, %v78_v12  ;;  %v113_v15 = vsel %vm111_vm3, %v78_v12, 0.0  ;;  %v128_v16 = vmul.f32 %v78_v12, %v78_v12  ;;  %v131_v19 = vsel %vm111_vm3, %v127_v8, 0.0 }
  0xde   :  { %110 = vst.msk [vmem:[%s247_s2 + $0xc] sm:$0xf] %vm106_vm2, %v168_v11  ;;  %v114_v17 = vadd.f32 %v113_v15, %v112_v13  ;;  %v136_v28 = vsel %vm111_vm3, %v130_v20, 0.0 }
  0xdf   :  { %108 = vst.msk [vmem:[%s247_s2 + $0x4] sm:$0xf] %vm106_vm2, %v166_v14  ;;  %v132_v21 = vsel %vm111_vm3, %v128_v16, 0.0 }
  0xe0   :  { %v116_v22 = vadd.f32 %v115_v18, %v114_v17  ;;  %v133_v23 = vadd.f32 %v132_v21, %v131_v19 }
  0xe2   :  { %v118_v26 = vadd.f32 %v117_v25, %v116_v22  ;;  %v135_v27 = vadd.f32 %v134_v24, %v133_v23 }
  0xe4   :  { %v119_v29 = vrot.slane %v118_v26, 4  ;;  %v137_v30 = vadd.f32 %v136_v28, %v135_v27 }
  0xe6   :  { %v120_v31 = vadd.f32 %v119_v29, %v118_v26  ;;  %v138_v32 = vrot.slane %v137_v30, 4 }
  0xe8   :  { %v121_v33 = vrot.slane %v120_v31, 2  ;;  %v139_v34 = vadd.f32 %v138_v32, %v137_v30 }
  0xea   :  { %v122_v35 = vadd.f32 %v121_v33, %v120_v31  ;;  %v140_v36 = vrot.slane %v139_v34, 2 }
  0xec   :  { %v123_v37 = vrot.slane %v122_v35, 1  ;;  %v141_v38 = vadd.f32 %v140_v36, %v139_v34 }
  0xee   :  { %v124_v39 = vadd.f32 %v123_v37, %v122_v35  ;;  %v142_v40 = vrot.slane %v141_v38, 1 }
  0xf0   :  { %126 = vst.msk [vmem:[%s248_s3] sm:$0x1] %vm125_vm4, %v124_v39  ;;  %v143_v41 = vadd.f32 %v142_v40, %v141_v38 }
  0xf2   :  { %144 = vst.msk [vmem:[%s249_s4] sm:$0x1] %vm125_vm4, %v143_v41 }

// kernel: _lambda_.30
= control target key start
LH: loop header
LB: loop body
LE: loop exit
PB: predicated region body
PF: predicated region fallthrough
CT: control target
= control target key end

     0   :  { %vm84_vm0 = vcmask 11264   ;;  %s172_s0 = inlined_call_operand.vmem [shape: bf16[32,2], index: 0, kind: input, shape index: {}]   ;;  %s173_s1 = inlined_call_operand.vmem [shape: f32[1,2], index: 1, kind: input, shape index: {}]   ;;  %s174_s2 = inlined_call_operand.vmem [shape: f32[1,2], index: 2, kind: input, shape index: {}]   ;;  %s175_s3 = inlined_call_operand.vmem [shape: bf16[32,2], index: 3, kind: output, shape index: {}]  }
   0x1   :  { %v104_v0 = vld [vmem:[%s172_s0] sm:$0xff]   ;;  %v111_v4 = vld [vmem:[%s172_s0 + $0x8] sm:$0xff]  }
   0x2   :  { %v93_v1 = vld [vmem:[%s173_s1] ss:$0 sm:$0xff]  ;;  %v105_v2 = vunpack.c.l.bf16 %v104_v0  ;;  %v106_v3 = vunpack.c.h.bf16 %v104_v0  ;;  %v109_v6 = vunpack.c.l.bf16 %v111_v4  ;;  %v110_v7 = vunpack.c.h.bf16 %v111_v4 }
   0x3   :  { %v94_v5 = vld [vmem:[%s174_s2] ss:$0 sm:$0xff] }
   0x4   :  { %v29_v8 = vmul.f32 %v105_v2, %v93_v1  ;;  %v30_v9 = vmul.f32 %v106_v3, %v93_v1  ;;  %v31_v10 = vmul.f32 %v109_v6, %v93_v1  ;;  %v32_v11 = vmul.f32 %v110_v7, %v93_v1 }
   0x6   :  { %v40_v12 = vadd.f32 %v94_v5, %v29_v8  ;;  %v41_v13 = vadd.f32 %v94_v5, %v30_v9  ;;  %v42_v14 = vadd.f32 %v94_v5, %v31_v10  ;;  %v43_v15 = vadd.f32 %v94_v5, %v32_v11 }
   0x8   :  { %v44_v16 = vsub.f32 0.0, %v40_v12  ;;  %v45_v17 = vsub.f32 0.0, %v41_v13  ;;  %v46_v18 = vsub.f32 0.0, %v42_v14  ;;  %v47_v19 = vsub.f32 0.0, %v43_v15 }
   0xa   :  { %v48_v20 = vmul.f32 1.442695, %v44_v16  ;;  %v50_v21 = vmul.f32 1.442695, %v45_v17  ;;  %v52_v22 = vmul.f32 1.442695, %v46_v18 }
   0xb   :  { %v54_v23 = vmul.f32 1.442695, %v47_v19 }
   0xc   :  { %112 = vpow2.f32 %v48_v20 }
   0xd   :  { %114 = vpow2.f32 %v50_v21 }
   0xe   :  { %116 = vpow2.f32 %v52_v22 }
   0xf   :  { %118 = vpow2.f32 %v54_v23 }
  0x16   :  { %v113_v24 = vpop.eup %112 }
  0x17   :  { %v115_v25 = vpop.eup %114  ;;  %v56_v26 = vadd.f32 1.0, %v113_v24 }
  0x18   :  { %v117_v27 = vpop.eup %116  ;;  %v57_v28 = vadd.f32 1.0, %v115_v25 }
  0x19   :  { %v119_v29 = vpop.eup %118  ;;  %120 = vrcp.f32 %v56_v26  ;;  %v58_v30 = vadd.f32 1.0, %v117_v27 }
  0x1a   :  { %122 = vrcp.f32 %v57_v28  ;;  %v59_v31 = vadd.f32 1.0, %v119_v29 }
  0x1b   :  { %124 = vrcp.f32 %v58_v30 }
  0x1c   :  { %126 = vrcp.f32 %v59_v31 }
  0x23   :  { %v121_v32 = vpop.eup %120 }
  0x24   :  { %v123_v33 = vpop.eup %122  ;;  %v64_v34 = vmul.f32 %v121_v32, %v40_v12 }
  0x25   :  { %v125_v35 = vpop.eup %124  ;;  %v65_v36 = vmul.f32 %v123_v33, %v41_v13 }
  0x26   :  { %v127_v37 = vpop.eup %126  ;;  %v99_v38 = vpack.c.bf16 %v64_v34, %v64_v34  ;;  %v66_v39 = vmul.f32 %v125_v35, %v42_v14 }
  0x27   :  { %v100_v40 = vpack.c.bf16 %v65_v36, %v65_v36  ;;  %v67_v41 = vmul.f32 %v127_v37, %v43_v15 }
  0x28   :  { %85 = vst.msk [vmem:[%s175_s3] sm:$0xf] %vm84_vm0, %v99_v38  ;;  %v101_v42 = vpack.c.bf16 %v66_v39, %v66_v39 }
  0x29   :  { %86 = vst.msk [vmem:[%s175_s3 + $0x4] sm:$0xf] %vm84_vm0, %v100_v40  ;;  %v102_v43 = vpack.c.bf16 %v67_v41, %v67_v41 }
  0x2a   :  { %87 = vst.msk [vmem:[%s175_s3 + $0x8] sm:$0xf] %vm84_vm0, %v101_v42 }
  0x2b   :  { %88 = vst.msk [vmem:[%s175_s3 + $0xc] sm:$0xf] %vm84_vm0, %v102_v43 }

// kernel: _lambda_.37
= control target key start
LH: loop header
LB: loop body
LE: loop exit
PB: predicated region body
PF: predicated region fallthrough
CT: control target
= control target key end

     0   :  { %vm54_vm0 = vcmask 1040384   ;;  %vm47_vm1 = vcmask 15360   ;;  %vm197_vm2 = vcmask 1041408   ;;  %vm190_vm3 = vcmask 31744   ;;  %s496_s3 = inlined_call_operand.vmem [shape: bf16[2,4], index: 3, kind: input, shape index: {}]   ;;  %s497_s0 = inlined_call_operand.vmem [shape: bf16[32,2], index: 0, kind: input, shape index: {}]   ;;  %s498_s5 = inlined_call_operand.vmem [shape: bf16[4,4], index: 5, kind: input, shape index: {}]   ;;  %s499_s4 = inlined_call_operand.vmem [shape: bf16[2,4], index: 4, kind: input, shape index: {}]   ;;  %s500_s1 = inlined_call_operand.vmem [shape: bf16[32,2], index: 1, kind: input, shape index: {}]   ;;  %s501_s2 = inlined_call_operand.vmem [shape: bf16[32,4], index: 2, kind: input, shape index: {}]   ;;  %s502_s6 = inlined_call_operand.vmem [shape: bf16[32,4], index: 6, kind: output, shape index: {0}]   ;;  %s503_s7 = inlined_call_operand.vmem [shape: f32[1,1,4], index: 7, kind: output, shape index: {1}]   ;;  %s504_s8 = inlined_call_operand.vmem [shape: f32[1,1,4], index: 8, kind: output, shape index: {2}]  }
   0x1   :  { %v31_v0 = vld [vmem:[%s496_s3] sm:$0x1]  ;;  %v379_v3 = vld [vmem:[%s497_s0 + $0x8] sm:$0xff]   ;;  %vm270_vm4 = vcmask 27648   ;;  %vm288_vm5 = vcmask 24576  }
   0x2   :  { %376 = vmatprep.subr.msk.bf16.mxu0 %vm54_vm0, %v31_v0  ;;  %v124_v1 = vsel %vm54_vm0, %v31_v0, 0  ;;  %v378_v2 = vld [vmem:[%s497_s0] sm:$0xff]   ;;  %v381_v9 = vld [vmem:[%s500_s1 + $0x8] sm:$0xff]  }
   0x3   :  { %356 = vmatpush3.bf16.msra.mxu0 %v124_v1  ;;  %v179_v4 = vld [vmem:[%s498_s5] sm:$0x3]  ;;  %357 = vmatprep.mubr.msk.bf16.mxu0 %vm47_vm1, %v378_v2  ;;  %v383_v11 = vld [vmem:[%s501_s2 + $0x8] sm:$0xff]  }
   0x4   :  { %v36_v5 = vld [vmem:[%s499_s4] sm:$0x1]  ;;  %377 = vmatprep.subr.msk.bf16.mxu0 %vm197_vm2, %v179_v4  ;;  %v199_v6 = vsel %vm197_vm2, %v179_v4, 0 }
   0x5   :  { %v56_v7 = vsel %vm54_vm0, %v36_v5, 0  ;;  %375 = vmatprep.subr.msk.bf16.mxu1 %vm54_vm0, %v36_v5  ;;  %v380_v8 = vld [vmem:[%s500_s1] sm:$0xff]  }
   0x6   :  { %358 = vmatmul.mubr.msk.bf16.vlgmr.msra.gmra.mrb[0].mxu0 %vm47_vm1, %v379_v3  ;;  %350 = vmatpush3.bf16.msra.mxu1 %v56_v7  ;;  %v382_v10 = vld [vmem:[%s501_s2] sm:$0xff]  }
   0x7   :  { %362 = vmatpush3.bf16.msra.mxu0 %v199_v6  ;;  %351 = vmatprep.mubr.msk.bf16.mxu1 %vm47_vm1, %v380_v8 }
   0x8   :  { %363 = vmatprep.mubr.msk.bf16.mxu0 %vm190_vm3, %v382_v10 }
   0x9   :  { %352 = vmatmul.mubr.msk.bf16.vlgmr.msra.gmra.mrb[0].mxu1 %vm47_vm1, %v381_v9 }
  0x12   :  { %364 = vmatmul.mubr.msk.bf16.vlgmr.msra.gmra.mrb[0].mxu0 %vm190_vm3, %v383_v11 }
  0xdc   :  { %v353_v12 = vpop.f32.mrb[0].mxu1 }
  0xdd   :  { %v92_v13 = vpop.f32.mrb[1].mxu1 }
  0xde   :  { %v354_v14 = vpop.f32.mrb[2].mxu1 }
  0xdf   :  { %v95_v15 = vpop.f32.mrb[3].mxu1 }
  0xe5   :  { %v365_v16 = vpop.f32.mrb[0].mxu0 }
  0xe6   :  { %v367_v17 = vadd.f32 %v365_v16, %v353_v12  ;;  %v235_v18 = vpop.f32.mrb[1].mxu0 }
  0xe7   :  { %v368_v19 = vadd.f32 %v235_v18, %v92_v13  ;;  %v366_v20 = vpop.f32.mrb[2].mxu0 }
  0xe8   :  { %v338_v21 = vpack.c.bf16 %v367_v17, %v367_v17  ;;  %v369_v22 = vadd.f32 %v366_v20, %v354_v14  ;;  %v238_v23 = vpop.f32.mrb[3].mxu0  ;;  %v292_v27 = vmul.f32 %v367_v17, %v367_v17  ;;  %v278_v34 = vsel %vm190_vm3, %v367_v17, 0.0 }
  0xe9   :  { %v336_v24 = vpack.c.bf16 %v368_v19, %v368_v19  ;;  %v290_v25 = vmul.f32 %v368_v19, %v368_v19  ;;  %v370_v26 = vadd.f32 %v238_v23, %v95_v15  ;;  %v275_v29 = vsel %vm190_vm3, %v368_v19, 0.0 }
  0xea   :  { %273 = vst.msk [vmem:[%s502_s6 + $0x8] sm:$0xf] %vm270_vm4, %v338_v21  ;;  %v339_v28 = vpack.c.bf16 %v369_v22, %v369_v22  ;;  %v293_v36 = vmul.f32 %v369_v22, %v369_v22  ;;  %v297_v40 = vsel %vm190_vm3, %v292_v27, 0.0  ;;  %v280_v41 = vsel %vm190_vm3, %v369_v22, 0.0 }
  0xeb   :  { %271 = vst.msk [vmem:[%s502_s6] sm:$0xf] %vm270_vm4, %v336_v24  ;;  %v337_v30 = vpack.c.bf16 %v370_v26, %v370_v26  ;;  %v276_v31 = vsel %vm190_vm3, %v370_v26, 0.0  ;;  %v291_v32 = vmul.f32 %v370_v26, %v370_v26  ;;  %v294_v35 = vsel %vm190_vm3, %v290_v25, 0.0 }
  0xec   :  { %274 = vst.msk [vmem:[%s502_s6 + $0xc] sm:$0xf] %vm270_vm4, %v339_v28  ;;  %v277_v33 = vadd.f32 %v276_v31, %v275_v29  ;;  %v299_v44 = vsel %vm190_vm3, %v293_v36, 0.0 }
  0xed   :  { %272 = vst.msk [vmem:[%s502_s6 + $0x4] sm:$0xf] %vm270_vm4, %v337_v30  ;;  %v295_v37 = vsel %vm190_vm3, %v291_v32, 0.0 }
  0xee   :  { %v279_v38 = vadd.f32 %v278_v34, %v277_v33  ;;  %v296_v39 = vadd.f32 %v295_v37, %v294_v35 }
  0xf0   :  { %v281_v42 = vadd.f32 %v280_v41, %v279_v38  ;;  %v298_v43 = vadd.f32 %v297_v40, %v296_v39 }
  0xf2   :  { %v282_v45 = vrot.slane %v281_v42, 4  ;;  %v300_v46 = vadd.f32 %v299_v44, %v298_v43 }
  0xf4   :  { %v283_v47 = vadd.f32 %v282_v45, %v281_v42  ;;  %v301_v48 = vrot.slane %v300_v46, 4 }
  0xf6   :  { %v284_v49 = vrot.slane %v283_v47, 2  ;;  %v302_v50 = vadd.f32 %v301_v48, %v300_v46 }
  0xf8   :  { %v285_v51 = vadd.f32 %v284_v49, %v283_v47  ;;  %v303_v52 = vrot.slane %v302_v50, 2 }
  0xfa   :  { %v286_v53 = vrot.slane %v285_v51, 1  ;;  %v304_v54 = vadd.f32 %v303_v52, %v302_v50 }
  0xfc   :  { %v287_v55 = vadd.f32 %v286_v53, %v285_v51  ;;  %v305_v56 = vrot.slane %v304_v54, 1 }
  0xfe   :  { %289 = vst.msk [vmem:[%s503_s7] sm:$0x1] %vm288_vm5, %v287_v55  ;;  %v306_v57 = vadd.f32 %v305_v56, %v304_v54 }
 0x100   :  { %307 = vst.msk [vmem:[%s504_s8] sm:$0x1] %vm288_vm5, %v306_v57 }

// kernel: _lambda_.33
= control target key start
LH: loop header
LB: loop body
LE: loop exit
PB: predicated region body
PF: predicated region fallthrough
CT: control target
= control target key end

     0   :  { %vm174_vm0 = vcmask 1040384   ;;  %vm21_vm1 = vcmask 8192   ;;  %vm22_vm2 = vsmask.f32 256  ;;  %v24_v0 = vld [vmem:[#allocation2] sm:$0x1]  ;;  %s810_s2 = inlined_call_operand.vmem [shape: bf16[3,2,2], index: 2, kind: input, shape index: {}]   ;;  %s811_s0 = inlined_call_operand.vmem [shape: bf16[2,16,2], index: 0, kind: input, shape index: {}]   ;;  %s812_s3 = inlined_call_operand.vmem [shape: bf16[2,2], index: 3, kind: input, shape index: {}]   ;;  %s813_s1 = inlined_call_operand.vmem [shape: bf16[32,2], index: 1, kind: input, shape index: {}]   ;;  %s814_s4 = inlined_call_operand.vmem [shape: bf16[32,2], index: 4, kind: output, shape index: {0}]   ;;  %s815_s5 = inlined_call_operand.vmem [shape: f32[1,1,2], index: 5, kind: output, shape index: {1}]   ;;  %s816_s6 = inlined_call_operand.vmem [shape: f32[1,1,2], index: 6, kind: output, shape index: {2}]  }
   0x1   :  { %v541_v1 = vld [vmem:[%s810_s2 + $0x2] sm:$0x1]  ;;  %vm653_vm3 = vmand %vm21_vm1, %vm22_vm2  ;;  %v27_v3 = vld [vmem:[#allocation2 + $0xc] sm:$0x1]  ;;  %vm30_vm4 = vsmask.f32 7938 }
   0x2   :  { %608 = vmatprep.subr.msk.bf16.mxu0 %vm174_vm0, %v541_v1  ;;  %v333_v4 = vsel %vm174_vm0, %v541_v1, 0  ;;  %v25_v5 = vsel %vm653_vm3, 0, %v24_v0  ;;  %v28_v6 = vsel %vm653_vm3, 0, %v27_v3  ;;  %vm31_vm5 = vmand %vm21_vm1, %vm30_vm4  ;;  %v32_v7 = vld [vmem:[#allocation2 + $0x8] sm:$0x1]  ;;  %vm84_vm6 = vcmask 11264  }
   0x3   :  { %583 = vmatpush3.bf16.msra.mxu0 %v333_v4  ;;  %26 = vst [vmem:[#allocation2] sm:$0x1] %v25_v5  ;;  %29 = vst [vmem:[#allocation2 + $0xc] sm:$0x1] %v28_v6  ;;  %v33_v8 = vsel %vm31_vm5, 0, %v32_v7  ;;  %vm301_vm10 = vcmask 1042432  }
   0x4   :  { %v35_v9 = vld [vmem:[#allocation2 + $0x14] sm:$0x1]  ;;  %v38_v10 = vld [vmem:[%s811_s0] sm:$0xf]  ;;  %34 = vst [vmem:[#allocation2 + $0x8] sm:$0x1] %v33_v8  ;;  %vm682_vm8 = vmand %vm84_vm6, %vm30_vm4 }
   0x5   :  { %v36_v11 = vsel %vm31_vm5, 0, %v35_v9  ;;  %v39_v12 = vld [vmem:[%s811_s0 + $0x4] sm:$0xf]  ;;  %v40_v13 = vld [vmem:[%s811_s0 + $0x8] sm:$0xf]  ;;  %v45_v14 = vshrl.u32 %v38_v10, 16 }
   0x6   :  { %37 = vst [vmem:[#allocation2 + $0x14] sm:$0x1] %v36_v11  ;;  %v41_v15 = vld [vmem:[%s811_s0 + $0xc] sm:$0xf]  ;;  %vm42_vm7 = vsmask.f32 4368 }
   0x7   :  { %v48_v16 = vshll.u32 %v38_v10, 16  ;;  %v53_v17 = vshrl.u32 %v39_v12, 16  ;;  %v47_v18 = vrot.slane %v45_v14, 7  ;;  %v56_v19 = vshll.u32 %v39_v12, 16  ;;  %v530_v22 = vld [vmem:[%s810_s2 + $0x1] sm:$0x1]  ;;  %vm688_vm9 = vmor %vm22_vm2, %vm42_vm7 }
   0x8   :  { %v62_v20 = vshrl.u32 %v40_v13, 16  ;;  %v65_v21 = vshll.u32 %v40_v13, 16  ;;  %v70_v24 = vshrl.u32 %v41_v15, 16  ;;  %v73_v25 = vshll.u32 %v41_v15, 16  ;;  %606 = vmatprep.subr.msk.bf16.mxu1 %vm174_vm0, %v530_v22  ;;  %v695_v31 = vld [vmem:[%s810_s2] sm:$0x1] }
   0x9   :  { %v55_v23 = vrot.slane %v53_v17, 7  ;;  %v50_v28 = vor.u32 %v48_v16, %v47_v18  ;;  %v51_v29 = vrot.slane %v47_v18, 4  ;;  %v392_v32 = vld [vmem:[%s812_s3] sm:$0x1]  ;;  %v176_v36 = vsel %vm174_vm0, %v530_v22, 0 }
   0xa   :  { %v64_v30 = vrot.slane %v62_v20, 7  ;;  %v72_v35 = vrot.slane %v70_v24, 7  ;;  %609 = vmatprep.subr.msk.bf16.mxu0 %vm174_vm0, %v392_v32  ;;  %v86_v39 = vld [vmem:[#allocation2] sm:$0xf]  ;;  %v94_v40 = vld [vmem:[#allocation2 + $0xc] sm:$0xf]  ;;  %571 = vmatpush3.bf16.msra.mxu1 %v176_v36 }
   0xb   :  { %v58_v33 = vor.u32 %v56_v19, %v55_v23  ;;  %v60_v34 = vrot.slane %v55_v23, 4  ;;  %v87_v43 = vsel %vm682_vm8, %v50_v28, %v86_v39  ;;  %v91_v44 = vld [vmem:[#allocation2 + $0x8] sm:$0x1]  ;;  %607 = vmatprep.subr.msk.bf16.mxu1 %vm174_vm0, %v695_v31  ;;  %vm302_vm11 = vcmask 1046532  }
   0xc   :  { %v67_v37 = vor.u32 %v65_v21, %v64_v30  ;;  %v68_v38 = vrot.slane %v64_v30, 4  ;;  %v75_v42 = vor.u32 %v73_v25, %v72_v35  ;;  %v77_v45 = vrot.slane %v72_v35, 4  ;;  %88 = vst [vmem:[#allocation2] sm:$0xf] %v87_v43  ;;  %vm718_vm13 = vmor %vm301_vm10, %vm302_vm11  ;;  %v610_v21 = vld [vmem:[%s813_s1] sm:$0xff]  }
   0xd   :  { %v59_v41 = vsel %vm688_vm9, %v51_v29, %v58_v33  ;;  %v92_v46 = vsel %vm653_vm3, %v60_v34, %v91_v44  ;;  %v98_v48 = vld [vmem:[#allocation2 + $0x14] sm:$0x1]  ;;  %vm167_vm12 = vcmask 15360   ;;  %vm108_vm14 = vsmask.f32 3328 }
   0xe   :  { %90 = vst.msk [vmem:[#allocation2 + $0x4] sm:$0xf] %vm84_vm6, %v59_v41  ;;  %v95_v47 = vsel %vm682_vm8, %v67_v37, %v94_v40  ;;  %v76_v49 = vsel %vm688_vm9, %v68_v38, %v75_v42  ;;  %93 = vst [vmem:[#allocation2 + $0x8] sm:$0x1] %v92_v46  ;;  %v99_v50 = vsel %vm653_vm3, %v77_v45, %v98_v48  ;;  %vm109_vm15 = vsmask.f32 7440 }
   0xf   :  { %96 = vst [vmem:[#allocation2 + $0xc] sm:$0xf] %v95_v47  ;;  %97 = vst.msk [vmem:[#allocation2 + $0x10] sm:$0xf] %vm84_vm6, %v76_v49  ;;  %v410_v52 = vsel %vm174_vm0, %v392_v32, 0  ;;  %v244_v49 = vsel %vm174_vm0, %v695_v31, 0 }
  0x10   :  { %100 = vst [vmem:[#allocation2 + $0x14] sm:$0x1] %v99_v50  ;;  %vm750_vm2 = vmor %vm108_vm14, %vm109_vm15  ;;  %v611_v50 = vld [vmem:[%s813_s1 + $0x8] sm:$0xff]  }
  0x13   :  { %v295_v54 = vld [vmem:[#allocation2] sm:$0xe] }
  0x14   :  { %v725_v55 = vld [vmem:[#allocation2] sm:$0xf]  ;;  %v539_v57 = vrot.slane %v295_v54, 9 }
  0x15   :  { %v723_v53 = vld [vmem:[#allocation2 + $0x4] sm:$0xf]  ;;  %v106_v56 = vld [vmem:[#allocation2 + $0x8] sm:$0x1]  ;;  %v112_v4 = vshrl.u32 %v725_v55, 16  ;;  %v115_v5 = vshll.u32 %v725_v55, 16 }
  0x16   :  { %v306_v58 = vrot.slane %v723_v53, 5  ;;  %v296_v59 = vld [vmem:[#allocation2 + $0xc] sm:$0xe]  ;;  %v309_v60 = vrot.slane %v106_v56, 5  ;;  %v728_v61 = vld [vmem:[#allocation2 + $0x10] sm:$0xf]  ;;  %v535_v47 = vcombine.low %v725_v55, %v723_v53 }
  0x17   :  { %v107_v62 = vld [vmem:[#allocation2 + $0x14] sm:$0x1]  ;;  %v540_v63 = vrot.slane %v296_v59, 9  ;;  %v313_v2 = vrot.slane %v728_v61, 5  ;;  %v121_v6 = vshll.u32 %v723_v53, 16  ;;  %v125_v7 = vshrl.u32 %v723_v53, 16 }
  0x18   :  { %v307_v0 = vsel %vm718_vm13, %v539_v57, %v306_v58  ;;  %v308_v1 = vrot.slane %v306_v58, 4  ;;  %v316_v3 = vrot.slane %v107_v62, 5  ;;  %v103_v8 = vld [vmem:[#allocation2 + $0xc] sm:$0xf]  ;;  %v131_v12 = vshll.u32 %v106_v56, 16 }
  0x19   :  { %v314_v10 = vsel %vm718_vm13, %v540_v63, %v313_v2  ;;  %v315_v11 = vrot.slane %v313_v2, 4  ;;  %v114_v14 = vrot.slane %v112_v4, 4  ;;  %v117_v15 = vrot.slane %v115_v5, 5 }
  0x1a   :  { %v310_v9 = vsel %vm718_vm13, %v308_v1, %v309_v60  ;;  %v123_v16 = vrot.slane %v121_v6, 5  ;;  %v127_v18 = vrot.slane %v125_v7, 4  ;;  %v133_v19 = vrot.slane %v131_v12, 5 }
  0x1b   :  { %v542_v13 = vcombine.low %v307_v0, %v310_v9  ;;  %v317_v17 = vsel %vm718_vm13, %v315_v11, %v316_v3  ;;  %v136_v20 = vshrl.u32 %v103_v8, 16  ;;  %v118_v23 = vor.u32 %v117_v15, %v114_v14 }
  0x1c   :  { %v543_v22 = vcombine.low %v314_v10, %v317_v17  ;;  %v139_v24 = vshll.u32 %v103_v8, 16  ;;  %v145_v25 = vshll.u32 %v728_v61, 16  ;;  %v128_v27 = vor.u32 %v127_v18, %v123_v16 }
  0x1d   :  { %584 = vmatprep.mubr.msk.bf16.mxu0 %vm167_vm12, %v542_v13  ;;  %v138_v28 = vrot.slane %v136_v20, 4  ;;  %v149_v29 = vshrl.u32 %v728_v61, 16  ;;  %v155_v30 = vshll.u32 %v107_v62, 16  ;;  %v119_v32 = vrot.slane %v118_v23, 4 }
  0x1e   :  { %585 = vmatmul.mubr.msk.bf16.vlgmr.msra.gmra.mrb[0].mxu0 %vm167_vm12, %v543_v22  ;;  %v141_v33 = vrot.slane %v139_v24, 5  ;;  %v147_v34 = vrot.slane %v145_v25, 5  ;;  %v129_v35 = vrot.slane %v128_v27, 4  ;;  %v536_v51 = vcombine.low %v103_v8, %v728_v61 }
  0x1f   :  { %v151_v36 = vrot.slane %v149_v29, 4  ;;  %589 = vmatpush3.bf16.msra.mxu0 %v410_v52  ;;  %590 = vmatprep.mubr.msk.bf16.mxu0 %vm167_vm12, %v610_v21  ;;  %v124_v37 = vsel %vm750_vm2, %v119_v32, %v123_v16  ;;  %v157_v41 = vrot.slane %v155_v30, 5 }
  0x20   :  { %v142_v38 = vor.u32 %v141_v33, %v138_v28  ;;  %v134_v39 = vsel %vm750_vm2, %v129_v35, %v133_v19 }
  0x21   :  { %v152_v40 = vor.u32 %v151_v36, %v147_v34  ;;  %v531_v42 = vcombine.low %v124_v37, %v134_v39 }
  0x22   :  { %v143_v43 = vrot.slane %v142_v38, 4 }
  0x23   :  { %v153_v44 = vrot.slane %v152_v40, 4  ;;  %572 = vmatprep.mubr.msk.bf16.mxu1 %vm167_vm12, %v531_v42 }
  0x24   :  { %v148_v45 = vsel %vm750_vm2, %v143_v43, %v147_v34 }
  0x25   :  { %v158_v46 = vsel %vm750_vm2, %v153_v44, %v157_v41 }
  0x26   :  { %v532_v48 = vcombine.low %v148_v45, %v158_v46 }
  0x28   :  { %573 = vmatmul.mubr.msk.bf16.vlgmr.msra.gmra.mrb[0].mxu1 %vm167_vm12, %v532_v48 }
  0x29   :  { %577 = vmatpush3.bf16.msra.mxu1 %v244_v49  ;;  %578 = vmatprep.mubr.msk.bf16.mxu1 %vm167_vm12, %v535_v47 }
  0x2a   :  { %591 = vmatmul.mubr.msk.bf16.vlgmr.msra.gmra.mrb[0].mxu0 %vm167_vm12, %v611_v50 }
  0x34   :  { %579 = vmatmul.mubr.msk.bf16.vlgmr.msra.gmra.mrb[0].mxu1 %vm167_vm12, %v536_v51 }
  0xfd   :  { %v592_v52 = vpop.f32.mrb[0].mxu0 }
  0xfe   :  { %v446_v53 = vpop.f32.mrb[1].mxu0 }
  0xff   :  { %v593_v54 = vpop.f32.mrb[2].mxu0 }
 0x100   :  { %v449_v55 = vpop.f32.mrb[3].mxu0 }
 0x107   :  { %v580_v31 = vpop.f32.mrb[0].mxu1 }
 0x108   :  { %v594_v56 = vadd.f32 %v592_v52, %v580_v31  ;;  %v280_v57 = vpop.f32.mrb[1].mxu1 }
 0x109   :  { %v595_v58 = vadd.f32 %v446_v53, %v280_v57  ;;  %v581_v59 = vpop.f32.mrb[2].mxu1 }
 0x10a   :  { %v556_v60 = vpack.c.bf16 %v594_v56, %v594_v56  ;;  %v596_v62 = vadd.f32 %v593_v54, %v581_v59  ;;  %v283_v63 = vpop.f32.mrb[3].mxu1  ;;  %v502_v61 = vmul.f32 %v594_v56, %v594_v56  ;;  %v488_v9 = vsel %vm167_vm12, %v594_v56, 0.0 }
 0x10b   :  { %v554_v0 = vpack.c.bf16 %v595_v58, %v595_v58  ;;  %v500_v1 = vmul.f32 %v595_v58, %v595_v58  ;;  %v597_v2 = vadd.f32 %v449_v55, %v283_v63  ;;  %v485_v4 = vsel %vm167_vm12, %v595_v58, 0.0 }
 0x10c   :  { %483 = vst.msk [vmem:[%s814_s4 + $0x8] sm:$0xf] %vm84_vm6, %v556_v60  ;;  %v557_v3 = vpack.c.bf16 %v596_v62, %v596_v62  ;;  %v503_v11 = vmul.f32 %v596_v62, %v596_v62  ;;  %v507_v15 = vsel %vm167_vm12, %v502_v61, 0.0  ;;  %v490_v16 = vsel %vm167_vm12, %v596_v62, 0.0 }
 0x10d   :  { %481 = vst.msk [vmem:[%s814_s4] sm:$0xf] %vm84_vm6, %v554_v0  ;;  %v555_v5 = vpack.c.bf16 %v597_v2, %v597_v2  ;;  %v486_v6 = vsel %vm167_vm12, %v597_v2, 0.0  ;;  %v501_v7 = vmul.f32 %v597_v2, %v597_v2  ;;  %v504_v10 = vsel %vm167_vm12, %v500_v1, 0.0 }
 0x10e   :  { %484 = vst.msk [vmem:[%s814_s4 + $0xc] sm:$0xf] %vm84_vm6, %v557_v3  ;;  %v487_v8 = vadd.f32 %v486_v6, %v485_v4  ;;  %v509_v19 = vsel %vm167_vm12, %v503_v11, 0.0 }
 0x10f   :  { %482 = vst.msk [vmem:[%s814_s4 + $0x4] sm:$0xf] %vm84_vm6, %v555_v5  ;;  %v505_v12 = vsel %vm167_vm12, %v501_v7, 0.0 }
 0x110   :  { %v489_v13 = vadd.f32 %v488_v9, %v487_v8  ;;  %v506_v14 = vadd.f32 %v505_v12, %v504_v10 }
 0x112   :  { %v491_v17 = vadd.f32 %v490_v16, %v489_v13  ;;  %v508_v18 = vadd.f32 %v507_v15, %v506_v14 }
 0x114   :  { %v492_v20 = vrot.slane %v491_v17, 4  ;;  %v510_v21 = vadd.f32 %v509_v19, %v508_v18 }
 0x116   :  { %v493_v22 = vadd.f32 %v492_v20, %v491_v17  ;;  %v511_v23 = vrot.slane %v510_v21, 4 }
 0x118   :  { %v494_v24 = vrot.slane %v493_v22, 2  ;;  %v512_v25 = vadd.f32 %v511_v23, %v510_v21 }
 0x11a   :  { %v495_v26 = vadd.f32 %v494_v24, %v493_v22  ;;  %v513_v27 = vrot.slane %v512_v25, 2 }
 0x11c   :  { %v496_v28 = vrot.slane %v495_v26, 1  ;;  %v514_v29 = vadd.f32 %v513_v27, %v512_v25 }
 0x11e   :  { %v497_v30 = vadd.f32 %v496_v28, %v495_v26  ;;  %v515_v32 = vrot.slane %v514_v29, 1 }
 0x120   :  { %499 = vst.msk [vmem:[%s815_s5] sm:$0x1] %vm21_vm1, %v497_v30  ;;  %v516_v33 = vadd.f32 %v515_v32, %v514_v29 }
 0x122   :  { %517 = vst.msk [vmem:[%s816_s6] sm:$0x1] %vm21_vm1, %v516_v33 }

// kernel: _lambda_.31
= control target key start
LH: loop header
LB: loop body
LE: loop exit
PB: predicated region body
PF: predicated region fallthrough
CT: control target
= control target key end

     0   :  { %vm168_vm0 = vcmask 1040384   ;;  %vm15_vm1 = vcmask 8192   ;;  %vm16_vm2 = vsmask.f32 256  ;;  %v18_v0 = vld [vmem:[#allocation2] sm:$0x1]  ;;  %s675_s1 = inlined_call_operand.vmem [shape: bf16[3,2,2], index: 1, kind: input, shape index: {}]   ;;  %s676_s0 = inlined_call_operand.vmem [shape: bf16[2,16,2], index: 0, kind: input, shape index: {}]   ;;  %s677_s2 = inlined_call_operand.vmem [shape: bf16[32,2], index: 2, kind: output, shape index: {0}]   ;;  %s678_s3 = inlined_call_operand.vmem [shape: f32[1,1,2], index: 3, kind: output, shape index: {1}]   ;;  %s679_s4 = inlined_call_operand.vmem [shape: f32[1,1,2], index: 4, kind: output, shape index: {2}]  }
   0x1   :  { %v99_v1 = vld [vmem:[%s675_s1] sm:$0x1]  ;;  %vm541_vm3 = vmand %vm15_vm1, %vm16_vm2  ;;  %v21_v3 = vld [vmem:[#allocation2 + $0xc] sm:$0x1]  ;;  %vm24_vm4 = vsmask.f32 7938 }
   0x2   :  { %507 = vmatprep.subr.msk.bf16.mxu0 %vm168_vm0, %v99_v1  ;;  %v238_v4 = vsel %vm168_vm0, %v99_v1, 0  ;;  %v19_v5 = vsel %vm541_vm3, 0, %v18_v0  ;;  %v22_v6 = vsel %vm541_vm3, 0, %v21_v3  ;;  %vm553_vm5 = vmand %vm15_vm1, %vm24_vm4  ;;  %v29_v8 = vld [vmem:[#allocation2 + $0x14] sm:$0x1]  ;;  %vm78_vm6 = vcmask 11264  }
   0x3   :  { %487 = vmatpush3.bf16.msra.mxu0 %v238_v4  ;;  %20 = vst [vmem:[#allocation2] sm:$0x1] %v19_v5  ;;  %23 = vst [vmem:[#allocation2 + $0xc] sm:$0x1] %v22_v6  ;;  %v30_v9 = vsel %vm553_vm5, 0, %v29_v8  ;;  %vm161_vm10 = vcmask 15360  }
   0x4   :  { %v32_v10 = vld [vmem:[%s676_s0] sm:$0xf]  ;;  %v33_v11 = vld [vmem:[%s676_s0 + $0x4] sm:$0xf]  ;;  %31 = vst [vmem:[#allocation2 + $0x14] sm:$0x1] %v30_v9  ;;  %vm580_vm8 = vmand %vm78_vm6, %vm24_vm4 }
   0x5   :  { %v34_v12 = vld [vmem:[%s676_s0 + $0x8] sm:$0xf]  ;;  %v35_v13 = vld [vmem:[%s676_s0 + $0xc] sm:$0xf]  ;;  %vm36_vm7 = vsmask.f32 4368 }
   0x6   :  { %v39_v14 = vshrl.u32 %v32_v10, 16  ;;  %v42_v15 = vshll.u32 %v32_v10, 16  ;;  %v47_v16 = vshrl.u32 %v33_v11, 16  ;;  %v50_v17 = vshll.u32 %v33_v11, 16  ;;  %v458_v18 = vld [vmem:[%s675_s1 + $0x2] sm:$0x1]  ;;  %vm588_vm9 = vmor %vm16_vm2, %vm36_vm7 }
   0x7   :  { %v56_v19 = vshrl.u32 %v34_v12, 16  ;;  %v59_v20 = vshll.u32 %v34_v12, 16  ;;  %v64_v21 = vshrl.u32 %v35_v13, 16  ;;  %v67_v22 = vshll.u32 %v35_v13, 16  ;;  %508 = vmatprep.subr.msk.bf16.mxu0 %vm168_vm0, %v458_v18  ;;  %v447_v23 = vld [vmem:[%s675_s1 + $0x1] sm:$0x1] }
   0x8   :  { %v41_v24 = vrot.slane %v39_v14, 7  ;;  %v49_v25 = vrot.slane %v47_v16, 7  ;;  %506 = vmatprep.subr.msk.bf16.mxu1 %vm168_vm0, %v447_v23  ;;  %v170_v27 = vsel %vm168_vm0, %v447_v23, 0  ;;  %v26_v28 = vld [vmem:[#allocation2 + $0x8] sm:$0x1]  ;;  %v327_v51 = vsel %vm168_vm0, %v458_v18, 0 }
   0x9   :  { %v58_v30 = vrot.slane %v56_v19, 7  ;;  %v66_v31 = vrot.slane %v64_v21, 7  ;;  %481 = vmatpush3.bf16.msra.mxu1 %v170_v27  ;;  %v27_v32 = vsel %vm553_vm5, 0, %v26_v28  ;;  %vm102_vm11 = vsmask.f32 3328 }
   0xa   :  { %v44_v33 = vor.u32 %v42_v15, %v41_v24  ;;  %v45_v34 = vrot.slane %v41_v24, 4  ;;  %v52_v35 = vor.u32 %v50_v17, %v49_v25  ;;  %28 = vst [vmem:[#allocation2 + $0x8] sm:$0x1] %v27_v32  ;;  %v80_v40 = vld [vmem:[#allocation2] sm:$0xf]  ;;  %v54_v48 = vrot.slane %v49_v25, 4 }
   0xb   :  { %v61_v36 = vor.u32 %v59_v20, %v58_v30  ;;  %v62_v37 = vrot.slane %v58_v30, 4  ;;  %v69_v38 = vor.u32 %v67_v22, %v66_v31  ;;  %v71_v39 = vrot.slane %v66_v31, 4  ;;  %v88_v41 = vld [vmem:[#allocation2 + $0xc] sm:$0xf]  ;;  %v92_v44 = vld [vmem:[#allocation2 + $0x14] sm:$0x1] }
   0xc   :  { %v53_v42 = vsel %vm588_vm9, %v45_v34, %v52_v35  ;;  %v81_v43 = vsel %vm580_vm8, %v44_v33, %v80_v40  ;;  %vm103_vm12 = vsmask.f32 7440  ;;  %vm295_vm13 = vcmask 1042432  }
   0xd   :  { %v70_v45 = vsel %vm588_vm9, %v62_v37, %v69_v38  ;;  %82 = vst [vmem:[#allocation2] sm:$0xf] %v81_v43  ;;  %84 = vst.msk [vmem:[#allocation2 + $0x4] sm:$0xf] %vm78_vm6, %v53_v42  ;;  %v89_v46 = vsel %vm580_vm8, %v61_v36, %v88_v41  ;;  %v93_v47 = vsel %vm541_vm3, %v71_v39, %v92_v44  ;;  %vm296_vm14 = vcmask 1046532  }
   0xe   :  { %90 = vst [vmem:[#allocation2 + $0xc] sm:$0xf] %v89_v46  ;;  %91 = vst.msk [vmem:[#allocation2 + $0x10] sm:$0xf] %vm78_vm6, %v70_v45 }
   0xf   :  { %94 = vst [vmem:[#allocation2 + $0x14] sm:$0x1] %v93_v47  ;;  %vm613_vm15 = vmor %vm102_vm11, %vm103_vm12 }
  0x10   :  { %vm619_vm0 = vmor %vm295_vm13, %vm296_vm14 }
  0x11   :  { %v85_v49 = vld [vmem:[#allocation2 + $0x8] sm:$0x1] }
  0x12   :  { %v86_v50 = vsel %vm541_vm3, %v54_v48, %v85_v49 }
  0x13   :  { %87 = vst [vmem:[#allocation2 + $0x8] sm:$0x1] %v86_v50 }
  0x14   :  { %v95_v52 = vld [vmem:[#allocation2] sm:$0xf]  ;;  %v96_v53 = vld [vmem:[#allocation2 + $0x4] sm:$0xf] }
  0x15   :  { %v106_v54 = vshrl.u32 %v95_v52, 16  ;;  %v109_v55 = vshll.u32 %v95_v52, 16  ;;  %v119_v56 = vshrl.u32 %v96_v53, 16  ;;  %v452_v57 = vcombine.low %v95_v52, %v96_v53  ;;  %v97_v58 = vld [vmem:[#allocation2 + $0xc] sm:$0xf] }
  0x16   :  { %v300_v59 = vrot.slane %v96_v53, 5  ;;  %v98_v60 = vld [vmem:[#allocation2 + $0x10] sm:$0xf]  ;;  %v130_v61 = vshrl.u32 %v97_v58, 16  ;;  %v133_v62 = vshll.u32 %v97_v58, 16  ;;  %v115_v63 = vshll.u32 %v96_v53, 16 }
  0x17   :  { %v108_v0 = vrot.slane %v106_v54, 4  ;;  %v111_v1 = vrot.slane %v109_v55, 5  ;;  %488 = vmatprep.mubr.msk.bf16.mxu0 %vm161_vm10, %v452_v57  ;;  %v143_v2 = vshrl.u32 %v98_v60, 16  ;;  %v453_v3 = vcombine.low %v97_v58, %v98_v60  ;;  %v101_v4 = vld [vmem:[#allocation2 + $0x14] sm:$0x1] }
  0x18   :  { %v302_v5 = vrot.slane %v300_v59, 4  ;;  %v132_v6 = vrot.slane %v130_v61, 4  ;;  %v135_v7 = vrot.slane %v133_v62, 5  ;;  %v117_v10 = vrot.slane %v115_v63, 5  ;;  %v289_v13 = vld [vmem:[#allocation2] sm:$0xe] }
  0x19   :  { %489 = vmatmul.mubr.msk.bf16.vlgmr.msra.gmra.mrb[0].mxu0 %vm161_vm10, %v453_v3  ;;  %v112_v9 = vor.u32 %v111_v1, %v108_v0  ;;  %v121_v11 = vrot.slane %v119_v56, 4  ;;  %v139_v12 = vshll.u32 %v98_v60, 16  ;;  %v307_v14 = vrot.slane %v98_v60, 5  ;;  %v290_v24 = vld [vmem:[#allocation2 + $0xc] sm:$0xe] }
  0x1a   :  { %493 = vmatpush3.bf16.msra.mxu0 %v327_v51  ;;  %v100_v15 = vld [vmem:[#allocation2 + $0x8] sm:$0x1]  ;;  %v136_v16 = vor.u32 %v135_v7, %v132_v6  ;;  %v145_v17 = vrot.slane %v143_v2, 4  ;;  %v149_v18 = vshll.u32 %v101_v4, 16  ;;  %v310_v27 = vrot.slane %v101_v4, 5 }
  0x1b   :  { %v113_v20 = vrot.slane %v112_v9, 4  ;;  %v122_v21 = vor.u32 %v121_v11, %v117_v10  ;;  %v125_v22 = vshll.u32 %v100_v15, 16  ;;  %v303_v23 = vrot.slane %v100_v15, 5 }
  0x1c   :  { %v137_v25 = vrot.slane %v136_v16, 4  ;;  %v141_v26 = vrot.slane %v139_v12, 5  ;;  %v456_v28 = vrot.slane %v289_v13, 9  ;;  %v151_v34 = vrot.slane %v149_v18, 5 }
  0x1d   :  { %v118_v29 = vsel %vm613_vm15, %v113_v20, %v117_v10  ;;  %v123_v30 = vrot.slane %v122_v21, 4  ;;  %v127_v31 = vrot.slane %v125_v22, 5  ;;  %v304_v32 = vsel %vm619_vm0, %v302_v5, %v303_v23 }
  0x1e   :  { %v146_v33 = vor.u32 %v145_v17, %v141_v26  ;;  %v301_v35 = vsel %vm619_vm0, %v456_v28, %v300_v59  ;;  %v457_v36 = vrot.slane %v290_v24, 9  ;;  %v309_v39 = vrot.slane %v307_v14, 4 }
  0x1f   :  { %v128_v37 = vsel %vm613_vm15, %v123_v30, %v127_v31  ;;  %v459_v38 = vcombine.low %v301_v35, %v304_v32  ;;  %v142_v41 = vsel %vm613_vm15, %v137_v25, %v141_v26 }
  0x20   :  { %v448_v40 = vcombine.low %v118_v29, %v128_v37  ;;  %v147_v42 = vrot.slane %v146_v33, 4  ;;  %v308_v43 = vsel %vm619_vm0, %v457_v36, %v307_v14  ;;  %v311_v44 = vsel %vm619_vm0, %v309_v39, %v310_v27 }
  0x21   :  { %494 = vmatprep.mubr.msk.bf16.mxu0 %vm161_vm10, %v459_v38  ;;  %v460_v46 = vcombine.low %v308_v43, %v311_v44 }
  0x22   :  { %482 = vmatprep.mubr.msk.bf16.mxu1 %vm161_vm10, %v448_v40  ;;  %v152_v45 = vsel %vm613_vm15, %v147_v42, %v151_v34 }
  0x23   :  { %v449_v47 = vcombine.low %v142_v41, %v152_v45 }
  0x25   :  { %483 = vmatmul.mubr.msk.bf16.vlgmr.msra.gmra.mrb[0].mxu1 %vm161_vm10, %v449_v47  ;;  %495 = vmatmul.mubr.msk.bf16.vlgmr.msra.gmra.mrb[0].mxu0 %vm161_vm10, %v460_v46 }
  0xf8   :  { %v484_v48 = vpop.f32.mrb[0].mxu1  ;;  %v496_v49 = vpop.f32.mrb[0].mxu0 }
  0xf9   :  { %v206_v50 = vpop.f32.mrb[1].mxu1  ;;  %v498_v51 = vadd.f32 %v496_v49, %v484_v48  ;;  %v363_v52 = vpop.f32.mrb[1].mxu0 }
  0xfa   :  { %v485_v53 = vpop.f32.mrb[2].mxu1  ;;  %v499_v54 = vadd.f32 %v363_v52, %v206_v50  ;;  %v497_v55 = vpop.f32.mrb[2].mxu0 }
  0xfb   :  { %v209_v56 = vpop.f32.mrb[3].mxu1  ;;  %v469_v57 = vpack.c.bf16 %v498_v51, %v498_v51  ;;  %v500_v58 = vadd.f32 %v497_v55, %v485_v53  ;;  %v366_v59 = vpop.f32.mrb[3].mxu0  ;;  %v419_v63 = vmul.f32 %v498_v51, %v498_v51  ;;  %v405_v6 = vsel %vm161_vm10, %v498_v51, 0.0 }
  0xfc   :  { %v467_v60 = vpack.c.bf16 %v499_v54, %v499_v54  ;;  %v417_v61 = vmul.f32 %v499_v54, %v499_v54  ;;  %v501_v62 = vadd.f32 %v366_v59, %v209_v56  ;;  %v402_v1 = vsel %vm161_vm10, %v499_v54, 0.0 }
  0xfd   :  { %400 = vst.msk [vmem:[%s677_s2 + $0x8] sm:$0xf] %vm78_vm6, %v469_v57  ;;  %v470_v0 = vpack.c.bf16 %v500_v58, %v500_v58  ;;  %v420_v8 = vmul.f32 %v500_v58, %v500_v58  ;;  %v424_v12 = vsel %vm161_vm10, %v419_v63, 0.0  ;;  %v407_v13 = vsel %vm161_vm10, %v500_v58, 0.0 }
  0xfe   :  { %398 = vst.msk [vmem:[%s677_s2] sm:$0xf] %vm78_vm6, %v467_v60  ;;  %v468_v2 = vpack.c.bf16 %v501_v62, %v501_v62  ;;  %v403_v3 = vsel %vm161_vm10, %v501_v62, 0.0  ;;  %v418_v4 = vmul.f32 %v501_v62, %v501_v62  ;;  %v421_v7 = vsel %vm161_vm10, %v417_v61, 0.0 }
  0xff   :  { %401 = vst.msk [vmem:[%s677_s2 + $0xc] sm:$0xf] %vm78_vm6, %v470_v0  ;;  %v404_v5 = vadd.f32 %v403_v3, %v402_v1  ;;  %v426_v16 = vsel %vm161_vm10, %v420_v8, 0.0 }
 0x100   :  { %399 = vst.msk [vmem:[%s677_s2 + $0x4] sm:$0xf] %vm78_vm6, %v468_v2  ;;  %v422_v9 = vsel %vm161_vm10, %v418_v4, 0.0 }
 0x101   :  { %v406_v10 = vadd.f32 %v405_v6, %v404_v5  ;;  %v423_v11 = vadd.f32 %v422_v9, %v421_v7 }
 0x103   :  { %v408_v14 = vadd.f32 %v407_v13, %v406_v10  ;;  %v425_v15 = vadd.f32 %v424_v12, %v423_v11 }
 0x105   :  { %v409_v17 = vrot.slane %v408_v14, 4  ;;  %v427_v18 = vadd.f32 %v426_v16, %v425_v15 }
 0x107   :  { %v410_v19 = vadd.f32 %v409_v17, %v408_v14  ;;  %v428_v20 = vrot.slane %v427_v18, 4 }
 0x109   :  { %v411_v21 = vrot.slane %v410_v19, 2  ;;  %v429_v22 = vadd.f32 %v428_v20, %v427_v18 }
 0x10b   :  { %v412_v23 = vadd.f32 %v411_v21, %v410_v19  ;;  %v430_v24 = vrot.slane %v429_v22, 2 }
 0x10d   :  { %v413_v25 = vrot.slane %v412_v23, 1  ;;  %v431_v26 = vadd.f32 %v430_v24, %v429_v22 }
 0x10f   :  { %v414_v27 = vadd.f32 %v413_v25, %v412_v23  ;;  %v432_v28 = vrot.slane %v431_v26, 1 }
 0x111   :  { %416 = vst.msk [vmem:[%s678_s3] sm:$0x1] %vm15_vm1, %v414_v27  ;;  %v433_v29 = vadd.f32 %v432_v28, %v431_v26 }
 0x113   :  { %434 = vst.msk [vmem:[%s679_s4] sm:$0x1] %vm15_vm1, %v433_v29 }

// kernel: _lambda_.38
= control target key start
LH: loop header
LB: loop body
LE: loop exit
PB: predicated region body
PF: predicated region fallthrough
CT: control target
= control target key end

     0   :  { %vm84_vm0 = vcmask 27648   ;;  %s172_s0 = inlined_call_operand.vmem [shape: bf16[32,4], index: 0, kind: input, shape index: {}]   ;;  %s173_s1 = inlined_call_operand.vmem [shape: f32[1,4], index: 1, kind: input, shape index: {}]   ;;  %s174_s2 = inlined_call_operand.vmem [shape: f32[1,4], index: 2, kind: input, shape index: {}]   ;;  %s175_s3 = inlined_call_operand.vmem [shape: bf16[32,4], index: 3, kind: output, shape index: {}]  }
   0x1   :  { %v104_v0 = vld [vmem:[%s172_s0] sm:$0xff]   ;;  %v111_v4 = vld [vmem:[%s172_s0 + $0x8] sm:$0xff]  }
   0x2   :  { %v93_v1 = vld [vmem:[%s173_s1] ss:$0 sm:$0xff]  ;;  %v105_v2 = vunpack.c.l.bf16 %v104_v0  ;;  %v106_v3 = vunpack.c.h.bf16 %v104_v0  ;;  %v109_v6 = vunpack.c.l.bf16 %v111_v4  ;;  %v110_v7 = vunpack.c.h.bf16 %v111_v4 }
   0x3   :  { %v94_v5 = vld [vmem:[%s174_s2] ss:$0 sm:$0xff] }
   0x4   :  { %v29_v8 = vmul.f32 %v105_v2, %v93_v1  ;;  %v30_v9 = vmul.f32 %v106_v3, %v93_v1  ;;  %v31_v10 = vmul.f32 %v109_v6, %v93_v1  ;;  %v32_v11 = vmul.f32 %v110_v7, %v93_v1 }
   0x6   :  { %v40_v12 = vadd.f32 %v94_v5, %v29_v8  ;;  %v41_v13 = vadd.f32 %v94_v5, %v30_v9  ;;  %v42_v14 = vadd.f32 %v94_v5, %v31_v10  ;;  %v43_v15 = vadd.f32 %v94_v5, %v32_v11 }
   0x8   :  { %v44_v16 = vsub.f32 0.0, %v40_v12  ;;  %v45_v17 = vsub.f32 0.0, %v41_v13  ;;  %v46_v18 = vsub.f32 0.0, %v42_v14  ;;  %v47_v19 = vsub.f32 0.0, %v43_v15 }
   0xa   :  { %v48_v20 = vmul.f32 1.442695, %v44_v16  ;;  %v50_v21 = vmul.f32 1.442695, %v45_v17  ;;  %v52_v22 = vmul.f32 1.442695, %v46_v18 }
   0xb   :  { %v54_v23 = vmul.f32 1.442695, %v47_v19 }
   0xc   :  { %112 = vpow2.f32 %v48_v20 }
   0xd   :  { %114 = vpow2.f32 %v50_v21 }
   0xe   :  { %116 = vpow2.f32 %v52_v22 }
   0xf   :  { %118 = vpow2.f32 %v54_v23 }
  0x16   :  { %v113_v24 = vpop.eup %112 }
  0x17   :  { %v115_v25 = vpop.eup %114  ;;  %v56_v26 = vadd.f32 1.0, %v113_v24 }
  0x18   :  { %v117_v27 = vpop.eup %116  ;;  %v57_v28 = vadd.f32 1.0, %v115_v25 }
  0x19   :  { %v119_v29 = vpop.eup %118  ;;  %120 = vrcp.f32 %v56_v26  ;;  %v58_v30 = vadd.f32 1.0, %v117_v27 }
  0x1a   :  { %122 = vrcp.f32 %v57_v28  ;;  %v59_v31 = vadd.f32 1.0, %v119_v29 }
  0x1b   :  { %124 = vrcp.f32 %v58_v30 }
  0x1c   :  { %126 = vrcp.f32 %v59_v31 }
  0x23   :  { %v121_v32 = vpop.eup %120 }
  0x24   :  { %v123_v33 = vpop.eup %122  ;;  %v64_v34 = vmul.f32 %v121_v32, %v40_v12 }
  0x25   :  { %v125_v35 = vpop.eup %124  ;;  %v65_v36 = vmul.f32 %v123_v33, %v41_v13 }
  0x26   :  { %v127_v37 = vpop.eup %126  ;;  %v99_v38 = vpack.c.bf16 %v64_v34, %v64_v34  ;;  %v66_v39 = vmul.f32 %v125_v35, %v42_v14 }
  0x27   :  { %v100_v40 = vpack.c.bf16 %v65_v36, %v65_v36  ;;  %v67_v41 = vmul.f32 %v127_v37, %v43_v15 }
  0x28   :  { %85 = vst.msk [vmem:[%s175_s3] sm:$0xf] %vm84_vm0, %v99_v38  ;;  %v101_v42 = vpack.c.bf16 %v66_v39, %v66_v39 }
  0x29   :  { %86 = vst.msk [vmem:[%s175_s3 + $0x4] sm:$0xf] %vm84_vm0, %v100_v40  ;;  %v102_v43 = vpack.c.bf16 %v67_v41, %v67_v41 }
  0x2a   :  { %87 = vst.msk [vmem:[%s175_s3 + $0x8] sm:$0xf] %vm84_vm0, %v101_v42 }
  0x2b   :  { %88 = vst.msk [vmem:[%s175_s3 + $0xc] sm:$0xf] %vm84_vm0, %v102_v43 }

// kernel: _lambda_.53
= control target key start
LH: loop header
LB: loop body
LE: loop exit
PB: predicated region body
PF: predicated region fallthrough
CT: control target
= control target key end

     0   :  { %vm121_vm0 = vcmask 1043456   ;;  %vm114_vm1 = vcmask 64512   ;;  %vm51_vm2 = vcmask 1041408   ;;  %vm44_vm3 = vcmask 31744   ;;  %s403_s3 = inlined_call_operand.vmem [shape: bf16[8,8], index: 3, kind: input, shape index: {}]   ;;  %s404_s0 = inlined_call_operand.vmem [shape: bf16[32,8], index: 0, kind: input, shape index: {}]   ;;  %s405_s5 = inlined_call_operand.vmem [shape: bf16[4,8], index: 5, kind: input, shape index: {}]   ;;  %s406_s4 = inlined_call_operand.vmem [shape: bf16[4,8], index: 4, kind: input, shape index: {}]   ;;  %s407_s1 = inlined_call_operand.vmem [shape: bf16[32,4], index: 1, kind: input, shape index: {}]   ;;  %s408_s2 = inlined_call_operand.vmem [shape: bf16[32,4], index: 2, kind: input, shape index: {}]   ;;  %s409_s6 = inlined_call_operand.vmem [shape: f32[32,8], index: 6, kind: output, shape index: {}]  }
   0x1   :  { %v28_v0 = vld [vmem:[%s403_s3] sm:$0xf]  ;;  %v310_v3 = vld [vmem:[%s404_s0 + $0x8] sm:$0xff]  }
   0x2   :  { %307 = vmatprep.subr.msk.bf16.mxu0 %vm121_vm0, %v28_v0  ;;  %v123_v1 = vsel %vm121_vm0, %v28_v0, 0  ;;  %v309_v2 = vld [vmem:[%s404_s0] sm:$0xff]   ;;  %v312_v9 = vld [vmem:[%s407_s1 + $0x8] sm:$0xff]  }
   0x3   :  { %287 = vmatpush3.bf16.msra.mxu0 %v123_v1  ;;  %v178_v4 = vld [vmem:[%s405_s5] sm:$0x3]  ;;  %288 = vmatprep.mubr.msk.bf16.mxu0 %vm114_vm1, %v309_v2  ;;  %v314_v11 = vld [vmem:[%s408_s2 + $0x8] sm:$0xff]  }
   0x4   :  { %v33_v5 = vld [vmem:[%s406_s4] sm:$0x3]  ;;  %308 = vmatprep.subr.msk.bf16.mxu0 %vm51_vm2, %v178_v4  ;;  %v196_v6 = vsel %vm51_vm2, %v178_v4, 0 }
   0x5   :  { %v53_v7 = vsel %vm51_vm2, %v33_v5, 0  ;;  %306 = vmatprep.subr.msk.bf16.mxu1 %vm51_vm2, %v33_v5  ;;  %v311_v8 = vld [vmem:[%s407_s1] sm:$0xff]  }
   0x6   :  { %289 = vmatmul.mubr.msk.bf16.vlgmr.msra.gmra.mrb[0].mxu0 %vm114_vm1, %v310_v3  ;;  %281 = vmatpush3.bf16.msra.mxu1 %v53_v7  ;;  %v313_v10 = vld [vmem:[%s408_s2] sm:$0xff]  }
   0x7   :  { %293 = vmatpush3.bf16.msra.mxu0 %v196_v6  ;;  %282 = vmatprep.mubr.msk.bf16.mxu1 %vm44_vm3, %v311_v8 }
   0x8   :  { %294 = vmatprep.mubr.msk.bf16.mxu0 %vm44_vm3, %v313_v10 }
   0x9   :  { %283 = vmatmul.mubr.msk.bf16.vlgmr.msra.gmra.mrb[0].mxu1 %vm44_vm3, %v312_v9 }
  0x12   :  { %295 = vmatmul.mubr.msk.bf16.vlgmr.msra.gmra.mrb[0].mxu0 %vm44_vm3, %v314_v11 }
  0xdc   :  { %v284_v12 = vpop.f32.mrb[0].mxu1 }
  0xdd   :  { %v89_v13 = vpop.f32.mrb[1].mxu1 }
  0xde   :  { %v285_v14 = vpop.f32.mrb[2].mxu1 }
  0xdf   :  { %v92_v15 = vpop.f32.mrb[3].mxu1 }
  0xe5   :  { %v296_v16 = vpop.f32.mrb[0].mxu0 }
  0xe6   :  { %v298_v17 = vadd.f32 %v296_v16, %v284_v12  ;;  %v232_v18 = vpop.f32.mrb[1].mxu0 }
  0xe7   :  { %v299_v19 = vadd.f32 %v232_v18, %v89_v13  ;;  %v297_v20 = vpop.f32.mrb[2].mxu0 }
  0xe8   :  { %253 = vst.msk [vmem:[%s409_s6 + $0x10] sm:$0xff] %vm114_vm1, %v298_v17  ;;  %v300_v21 = vadd.f32 %v297_v20, %v285_v14  ;;  %v235_v22 = vpop.f32.mrb[3].mxu0 }
  0xe9   :  { %251 = vst.msk [vmem:[%s409_s6] sm:$0xff] %vm114_vm1, %v299_v19  ;;  %v301_v23 = vadd.f32 %v235_v22, %v92_v15 }
  0xea   :  { %254 = vst.msk [vmem:[%s409_s6 + $0x18] sm:$0xff] %vm114_vm1, %v300_v21 }
  0xeb   :  { %252 = vst.msk [vmem:[%s409_s6 + $0x8] sm:$0xff] %vm114_vm1, %v301_v23 }

// kernel: _lambda_.39
= control target key start
LH: loop header
LB: loop body
LE: loop exit
PB: predicated region body
PF: predicated region fallthrough
CT: control target
= control target key end

     0   :  { %vm168_vm0 = vcmask 1041408   ;;  %vm15_vm1 = vcmask 24576   ;;  %vm16_vm2 = vsmask.f32 256  ;;  %v18_v0 = vld [vmem:[#allocation2] sm:$0x1]  ;;  %s675_s1 = inlined_call_operand.vmem [shape: bf16[3,4,4], index: 1, kind: input, shape index: {}]   ;;  %s676_s0 = inlined_call_operand.vmem [shape: bf16[2,16,4], index: 0, kind: input, shape index: {}]   ;;  %s677_s2 = inlined_call_operand.vmem [shape: bf16[32,4], index: 2, kind: output, shape index: {0}]   ;;  %s678_s3 = inlined_call_operand.vmem [shape: f32[1,1,4], index: 3, kind: output, shape index: {1}]   ;;  %s679_s4 = inlined_call_operand.vmem [shape: f32[1,1,4], index: 4, kind: output, shape index: {2}]  }
   0x1   :  { %v99_v1 = vld [vmem:[%s675_s1] sm:$0x3]  ;;  %vm541_vm3 = vmand %vm15_vm1, %vm16_vm2  ;;  %v21_v3 = vld [vmem:[#allocation2 + $0xc] sm:$0x1]  ;;  %vm24_vm4 = vsmask.f32 7938 }
   0x2   :  { %507 = vmatprep.subr.msk.bf16.mxu0 %vm168_vm0, %v99_v1  ;;  %v238_v4 = vsel %vm168_vm0, %v99_v1, 0  ;;  %v19_v5 = vsel %vm541_vm3, 0, %v18_v0  ;;  %v22_v6 = vsel %vm541_vm3, 0, %v21_v3  ;;  %vm553_vm5 = vmand %vm15_vm1, %vm24_vm4  ;;  %v29_v8 = vld [vmem:[#allocation2 + $0x14] sm:$0x1]  ;;  %vm78_vm6 = vcmask 27648  }
   0x3   :  { %487 = vmatpush3.bf16.msra.mxu0 %v238_v4  ;;  %20 = vst [vmem:[#allocation2] sm:$0x1] %v19_v5  ;;  %23 = vst [vmem:[#allocation2 + $0xc] sm:$0x1] %v22_v6  ;;  %v30_v9 = vsel %vm553_vm5, 0, %v29_v8  ;;  %vm161_vm10 = vcmask 31744  }
   0x4   :  { %v32_v10 = vld [vmem:[%s676_s0] sm:$0xf]  ;;  %v33_v11 = vld [vmem:[%s676_s0 + $0x4] sm:$0xf]  ;;  %31 = vst [vmem:[#allocation2 + $0x14] sm:$0x1] %v30_v9  ;;  %vm580_vm8 = vmand %vm78_vm6, %vm24_vm4 }
   0x5   :  { %v34_v12 = vld [vmem:[%s676_s0 + $0x8] sm:$0xf]  ;;  %v35_v13 = vld [vmem:[%s676_s0 + $0xc] sm:$0xf]  ;;  %vm36_vm7 = vsmask.f32 4368 }
   0x6   :  { %v39_v14 = vshrl.u32 %v32_v10, 16  ;;  %v42_v15 = vshll.u32 %v32_v10, 16  ;;  %v47_v16 = vshrl.u32 %v33_v11, 16  ;;  %v50_v17 = vshll.u32 %v33_v11, 16  ;;  %v458_v18 = vld [vmem:[%s675_s1 + $0x4] sm:$0x3]  ;;  %vm588_vm9 = vmor %vm16_vm2, %vm36_vm7 }
   0x7   :  { %v56_v19 = vshrl.u32 %v34_v12, 16  ;;  %v59_v20 = vshll.u32 %v34_v12, 16  ;;  %v64_v21 = vshrl.u32 %v35_v13, 16  ;;  %v67_v22 = vshll.u32 %v35_v13, 16  ;;  %508 = vmatprep.subr.msk.bf16.mxu0 %vm168_vm0, %v458_v18  ;;  %v447_v23 = vld [vmem:[%s675_s1 + $0x2] sm:$0x3] }
   0x8   :  { %v41_v24 = vrot.slane %v39_v14, 7  ;;  %v49_v25 = vrot.slane %v47_v16, 7  ;;  %506 = vmatprep.subr.msk.bf16.mxu1 %vm168_vm0, %v447_v23  ;;  %v170_v27 = vsel %vm168_vm0, %v447_v23, 0  ;;  %v26_v28 = vld [vmem:[#allocation2 + $0x8] sm:$0x1]  ;;  %v327_v51 = vsel %vm168_vm0, %v458_v18, 0 }
   0x9   :  { %v58_v30 = vrot.slane %v56_v19, 7  ;;  %v66_v31 = vrot.slane %v64_v21, 7  ;;  %481 = vmatpush3.bf16.msra.mxu1 %v170_v27  ;;  %v27_v32 = vsel %vm553_vm5, 0, %v26_v28  ;;  %vm102_vm11 = vsmask.f32 3328 }
   0xa   :  { %v44_v33 = vor.u32 %v42_v15, %v41_v24  ;;  %v45_v34 = vrot.slane %v41_v24, 4  ;;  %v52_v35 = vor.u32 %v50_v17, %v49_v25  ;;  %28 = vst [vmem:[#allocation2 + $0x8] sm:$0x1] %v27_v32  ;;  %v80_v40 = vld [vmem:[#allocation2] sm:$0xf]  ;;  %v54_v48 = vrot.slane %v49_v25, 4 }
   0xb   :  { %v61_v36 = vor.u32 %v59_v20, %v58_v30  ;;  %v62_v37 = vrot.slane %v58_v30, 4  ;;  %v69_v38 = vor.u32 %v67_v22, %v66_v31  ;;  %v71_v39 = vrot.slane %v66_v31, 4  ;;  %v88_v41 = vld [vmem:[#allocation2 + $0xc] sm:$0xf]  ;;  %v92_v44 = vld [vmem:[#allocation2 + $0x14] sm:$0x1] }
   0xc   :  { %v53_v42 = vsel %vm588_vm9, %v45_v34, %v52_v35  ;;  %v81_v43 = vsel %vm580_vm8, %v44_v33, %v80_v40  ;;  %vm103_vm12 = vsmask.f32 7440  ;;  %vm295_vm13 = vcmask 1042432  }
   0xd   :  { %v70_v45 = vsel %vm588_vm9, %v62_v37, %v69_v38  ;;  %82 = vst [vmem:[#allocation2] sm:$0xf] %v81_v43  ;;  %84 = vst.msk [vmem:[#allocation2 + $0x4] sm:$0xf] %vm78_vm6, %v53_v42  ;;  %v89_v46 = vsel %vm580_vm8, %v61_v36, %v88_v41  ;;  %v93_v47 = vsel %vm541_vm3, %v71_v39, %v92_v44  ;;  %vm296_vm14 = vcmask 1046532  }
   0xe   :  { %90 = vst [vmem:[#allocation2 + $0xc] sm:$0xf] %v89_v46  ;;  %91 = vst.msk [vmem:[#allocation2 + $0x10] sm:$0xf] %vm78_vm6, %v70_v45 }
   0xf   :  { %94 = vst [vmem:[#allocation2 + $0x14] sm:$0x1] %v93_v47  ;;  %vm613_vm15 = vmor %vm102_vm11, %vm103_vm12 }
  0x10   :  { %vm619_vm0 = vmor %vm295_vm13, %vm296_vm14 }
  0x11   :  { %v85_v49 = vld [vmem:[#allocation2 + $0x8] sm:$0x1] }
  0x12   :  { %v86_v50 = vsel %vm541_vm3, %v54_v48, %v85_v49 }
  0x13   :  { %87 = vst [vmem:[#allocation2 + $0x8] sm:$0x1] %v86_v50 }
  0x14   :  { %v95_v52 = vld [vmem:[#allocation2] sm:$0xf]  ;;  %v96_v53 = vld [vmem:[#allocation2 + $0x4] sm:$0xf] }
  0x15   :  { %v106_v54 = vshrl.u32 %v95_v52, 16  ;;  %v109_v55 = vshll.u32 %v95_v52, 16  ;;  %v119_v56 = vshrl.u32 %v96_v53, 16  ;;  %v452_v57 = vcombine.low %v95_v52, %v96_v53  ;;  %v97_v58 = vld [vmem:[#allocation2 + $0xc] sm:$0xf] }
  0x16   :  { %v300_v59 = vrot.slane %v96_v53, 5  ;;  %v98_v60 = vld [vmem:[#allocation2 + $0x10] sm:$0xf]  ;;  %v130_v61 = vshrl.u32 %v97_v58, 16  ;;  %v133_v62 = vshll.u32 %v97_v58, 16  ;;  %v115_v63 = vshll.u32 %v96_v53, 16 }
  0x17   :  { %v108_v0 = vrot.slane %v106_v54, 4  ;;  %v111_v1 = vrot.slane %v109_v55, 5  ;;  %488 = vmatprep.mubr.msk.bf16.mxu0 %vm161_vm10, %v452_v57  ;;  %v143_v2 = vshrl.u32 %v98_v60, 16  ;;  %v453_v3 = vcombine.low %v97_v58, %v98_v60  ;;  %v101_v4 = vld [vmem:[#allocation2 + $0x14] sm:$0x1] }
  0x18   :  { %v302_v5 = vrot.slane %v300_v59, 4  ;;  %v132_v6 = vrot.slane %v130_v61, 4  ;;  %v135_v7 = vrot.slane %v133_v62, 5  ;;  %v117_v10 = vrot.slane %v115_v63, 5  ;;  %v289_v13 = vld [vmem:[#allocation2] sm:$0xe] }
  0x19   :  { %489 = vmatmul.mubr.msk.bf16.vlgmr.msra.gmra.mrb[0].mxu0 %vm161_vm10, %v453_v3  ;;  %v112_v9 = vor.u32 %v111_v1, %v108_v0  ;;  %v121_v11 = vrot.slane %v119_v56, 4  ;;  %v139_v12 = vshll.u32 %v98_v60, 16  ;;  %v307_v14 = vrot.slane %v98_v60, 5  ;;  %v290_v24 = vld [vmem:[#allocation2 + $0xc] sm:$0xe] }
  0x1a   :  { %493 = vmatpush3.bf16.msra.mxu0 %v327_v51  ;;  %v100_v15 = vld [vmem:[#allocation2 + $0x8] sm:$0x1]  ;;  %v136_v16 = vor.u32 %v135_v7, %v132_v6  ;;  %v145_v17 = vrot.slane %v143_v2, 4  ;;  %v149_v18 = vshll.u32 %v101_v4, 16  ;;  %v310_v27 = vrot.slane %v101_v4, 5 }
  0x1b   :  { %v113_v20 = vrot.slane %v112_v9, 4  ;;  %v122_v21 = vor.u32 %v121_v11, %v117_v10  ;;  %v125_v22 = vshll.u32 %v100_v15, 16  ;;  %v303_v23 = vrot.slane %v100_v15, 5 }
  0x1c   :  { %v137_v25 = vrot.slane %v136_v16, 4  ;;  %v141_v26 = vrot.slane %v139_v12, 5  ;;  %v456_v28 = vrot.slane %v289_v13, 9  ;;  %v151_v34 = vrot.slane %v149_v18, 5 }
  0x1d   :  { %v118_v29 = vsel %vm613_vm15, %v113_v20, %v117_v10  ;;  %v123_v30 = vrot.slane %v122_v21, 4  ;;  %v127_v31 = vrot.slane %v125_v22, 5  ;;  %v304_v32 = vsel %vm619_vm0, %v302_v5, %v303_v23 }
  0x1e   :  { %v146_v33 = vor.u32 %v145_v17, %v141_v26  ;;  %v301_v35 = vsel %vm619_vm0, %v456_v28, %v300_v59  ;;  %v457_v36 = vrot.slane %v290_v24, 9  ;;  %v309_v39 = vrot.slane %v307_v14, 4 }
  0x1f   :  { %v128_v37 = vsel %vm613_vm15, %v123_v30, %v127_v31  ;;  %v459_v38 = vcombine.low %v301_v35, %v304_v32  ;;  %v142_v41 = vsel %vm613_vm15, %v137_v25, %v141_v26 }
  0x20   :  { %v448_v40 = vcombine.low %v118_v29, %v128_v37  ;;  %v147_v42 = vrot.slane %v146_v33, 4  ;;  %v308_v43 = vsel %vm619_vm0, %v457_v36, %v307_v14  ;;  %v311_v44 = vsel %vm619_vm0, %v309_v39, %v310_v27 }
  0x21   :  { %494 = vmatprep.mubr.msk.bf16.mxu0 %vm161_vm10, %v459_v38  ;;  %v460_v46 = vcombine.low %v308_v43, %v311_v44 }
  0x22   :  { %482 = vmatprep.mubr.msk.bf16.mxu1 %vm161_vm10, %v448_v40  ;;  %v152_v45 = vsel %vm613_vm15, %v147_v42, %v151_v34 }
  0x23   :  { %v449_v47 = vcombine.low %v142_v41, %v152_v45 }
  0x25   :  { %483 = vmatmul.mubr.msk.bf16.vlgmr.msra.gmra.mrb[0].mxu1 %vm161_vm10, %v449_v47  ;;  %495 = vmatmul.mubr.msk.bf16.vlgmr.msra.gmra.mrb[0].mxu0 %vm161_vm10, %v460_v46 }
  0xf8   :  { %v484_v48 = vpop.f32.mrb[0].mxu1  ;;  %v496_v49 = vpop.f32.mrb[0].mxu0 }
  0xf9   :  { %v206_v50 = vpop.f32.mrb[1].mxu1  ;;  %v498_v51 = vadd.f32 %v496_v49, %v484_v48  ;;  %v363_v52 = vpop.f32.mrb[1].mxu0 }
  0xfa   :  { %v485_v53 = vpop.f32.mrb[2].mxu1  ;;  %v499_v54 = vadd.f32 %v363_v52, %v206_v50  ;;  %v497_v55 = vpop.f32.mrb[2].mxu0 }
  0xfb   :  { %v209_v56 = vpop.f32.mrb[3].mxu1  ;;  %v469_v57 = vpack.c.bf16 %v498_v51, %v498_v51  ;;  %v500_v58 = vadd.f32 %v497_v55, %v485_v53  ;;  %v366_v59 = vpop.f32.mrb[3].mxu0  ;;  %v419_v63 = vmul.f32 %v498_v51, %v498_v51  ;;  %v405_v6 = vsel %vm161_vm10, %v498_v51, 0.0 }
  0xfc   :  { %v467_v60 = vpack.c.bf16 %v499_v54, %v499_v54  ;;  %v417_v61 = vmul.f32 %v499_v54, %v499_v54  ;;  %v501_v62 = vadd.f32 %v366_v59, %v209_v56  ;;  %v402_v1 = vsel %vm161_vm10, %v499_v54, 0.0 }
  0xfd   :  { %400 = vst.msk [vmem:[%s677_s2 + $0x8] sm:$0xf] %vm78_vm6, %v469_v57  ;;  %v470_v0 = vpack.c.bf16 %v500_v58, %v500_v58  ;;  %v420_v8 = vmul.f32 %v500_v58, %v500_v58  ;;  %v424_v12 = vsel %vm161_vm10, %v419_v63, 0.0  ;;  %v407_v13 = vsel %vm161_vm10, %v500_v58, 0.0 }
  0xfe   :  { %398 = vst.msk [vmem:[%s677_s2] sm:$0xf] %vm78_vm6, %v467_v60  ;;  %v468_v2 = vpack.c.bf16 %v501_v62, %v501_v62  ;;  %v403_v3 = vsel %vm161_vm10, %v501_v62, 0.0  ;;  %v418_v4 = vmul.f32 %v501_v62, %v501_v62  ;;  %v421_v7 = vsel %vm161_vm10, %v417_v61, 0.0 }
  0xff   :  { %401 = vst.msk [vmem:[%s677_s2 + $0xc] sm:$0xf] %vm78_vm6, %v470_v0  ;;  %v404_v5 = vadd.f32 %v403_v3, %v402_v1  ;;  %v426_v16 = vsel %vm161_vm10, %v420_v8, 0.0 }
 0x100   :  { %399 = vst.msk [vmem:[%s677_s2 + $0x4] sm:$0xf] %vm78_vm6, %v468_v2  ;;  %v422_v9 = vsel %vm161_vm10, %v418_v4, 0.0 }
 0x101   :  { %v406_v10 = vadd.f32 %v405_v6, %v404_v5  ;;  %v423_v11 = vadd.f32 %v422_v9, %v421_v7 }
 0x103   :  { %v408_v14 = vadd.f32 %v407_v13, %v406_v10  ;;  %v425_v15 = vadd.f32 %v424_v12, %v423_v11 }
 0x105   :  { %v409_v17 = vrot.slane %v408_v14, 4  ;;  %v427_v18 = vadd.f32 %v426_v16, %v425_v15 }
 0x107   :  { %v410_v19 = vadd.f32 %v409_v17, %v408_v14  ;;  %v428_v20 = vrot.slane %v427_v18, 4 }
 0x109   :  { %v411_v21 = vrot.slane %v410_v19, 2  ;;  %v429_v22 = vadd.f32 %v428_v20, %v427_v18 }
 0x10b   :  { %v412_v23 = vadd.f32 %v411_v21, %v410_v19  ;;  %v430_v24 = vrot.slane %v429_v22, 2 }
 0x10d   :  { %v413_v25 = vrot.slane %v412_v23, 1  ;;  %v431_v26 = vadd.f32 %v430_v24, %v429_v22 }
 0x10f   :  { %v414_v27 = vadd.f32 %v413_v25, %v412_v23  ;;  %v432_v28 = vrot.slane %v431_v26, 1 }
 0x111   :  { %416 = vst.msk [vmem:[%s678_s3] sm:$0x1] %vm15_vm1, %v414_v27  ;;  %v433_v29 = vadd.f32 %v432_v28, %v431_v26 }
 0x113   :  { %434 = vst.msk [vmem:[%s679_s4] sm:$0x1] %vm15_vm1, %v433_v29 }

</bundles_post_ra>
